<compile_context>
chip_gen: v7x
topology: tpu7x:2x2x1
jax: 0.10.0
libtpu: 0.0.40
codegen_flags: <defaults>
</compile_context>

<pallas_src>
import functools

import numpy as np
import jax
import jax.numpy as jnp
from jax.experimental import pallas as pl
from jax.experimental.pallas import tpu as pltpu


# ----------------------------- Pallas kernel --------------------------------
def _fused_encoder_kernel(p1_ref, w1_ref, g_ref, w2_ref, b2_ref, o_ref,
                          *, n_batch, m1b, m2b, n_taps):
    """Whole encoder in one kernel.

    p1_ref : (N*m1b, 128)      layer-1 im2col patches, K padded to 128,
                               column 25 == 1.0 (carries the layer-1 bias).
    w1_ref : (128, 8)          layer-1 weights (K x Cout1, Cout1 padded 3->8),
                               row 25 == b1.
    g_ref  : (n_taps*m2b, m1b) constant 0/1 gather matrix: layer-2 im2col
                               (incl. zero padding) expressed as a matmul.
    w2_ref : (n_taps, 8, 128)  per-tap layer-2 weights (Cin1 x Cout2 padded).
    b2_ref : (1, 128)          layer-2 bias (padded 6->128 with zeros).
    o_ref  : (N*m2b, 128)      lane-dense output (Cout2 padded 6->128).
    """
    # ---- layer 1: GEMM (+ bias via ones-column) + tanh, all on-chip ---------
    h = jnp.tanh(jnp.dot(p1_ref[...], w1_ref[...],
                         preferred_element_type=jnp.float32))        # (N*m1b, 8)

    g = g_ref[...]                                                   # (n_taps*m2b, m1b)
    b2 = b2_ref[...]                                                 # (1, 128)

    for n in range(n_batch):                                         # static unroll (N=2)
        hn = h[n * m1b:(n + 1) * m1b, :]                             # (m1b, 8)
        # layer-2 im2col + zero padding as one exact 0/1 gather matmul (MXU).
        gh = jnp.dot(g, hn, preferred_element_type=jnp.float32)      # (n_taps*m2b, 8)
        acc = jnp.zeros((m2b, o_ref.shape[1]), jnp.float32)          # (m2b, 128)
        for s in range(n_taps):                                      # 25, static unroll
            acc = acc + jnp.dot(gh[s * m2b:(s + 1) * m2b, :], w2_ref[s],
                                preferred_element_type=jnp.float32)
        # lane-dense (unmasked) store of the final tile
        o_ref[n * m2b:(n + 1) * m2b, :] = jnp.tanh(acc + b2)


# ------------------------- host-side constant helpers ------------------------
@functools.lru_cache(maxsize=None)
def _gather_matrix(h1, w1, h2, w2, kh, kw, stride, pad):
    """0/1 matrix mapping layer-1 output positions -> layer-2 patch rows.

    Row index = tap * (h2*w2) + oh*w2 + ow, column index = ih*w1 + iw.
    Out-of-range (padding) taps simply have an all-zero row.
    """
    m1b, m2b = h1 * w1, h2 * w2
    g = np.zeros((kh * kw * m2b, m1b), np.float32)
    for a in range(kh):
        for b in range(kw):
            s = a * kw + b
            for oh in range(h2):
                for ow in range(w2):
                    ih = stride * oh + a - pad
                    iw = stride * ow + b - pad
                    if 0 <= ih < h1 and 0 <= iw < w1:
                        g[s * m2b + oh * w2 + ow, ih * w1 + iw] = 1.0
    return g


# ------------------------------- forward pass --------------------------------
def encoder_forward(x, params):
    """PyTorch-semantics Encoder forward.  x: (N, 1, H, W) NCHW, f32."""
    w1, b1, w2, b2 = params
    N, Ci, H, W = x.shape
    KH, KW, STRIDE, PAD = 5, 5, 3, 2
    C1 = w1.shape[0]                       # 3
    C2 = w2.shape[0]                       # 6
    H1 = (H + 2 * PAD - KH) // STRIDE + 1
    W1 = (W + 2 * PAD - KW) // STRIDE + 1
    H2 = (H1 + 2 * PAD - KH) // STRIDE + 1
    W2 = (W1 + 2 * PAD - KW) // STRIDE + 1
    M1B, M2B = H1 * W1, H2 * W2
    K1 = Ci * KH * KW                      # 25
    NTAPS = KH * KW                        # 25

    K1P = 128                              # contraction dim padded (col K1 = bias "1")
    C1P = 8                                # intermediate channels padded 3 -> 8
    C2P = 128                              # output channels padded 6 -> 128 (lane-dense)

    # ---- layer-1 im2col as ONE fused XLA op (no 25-slice stack/transposes) --
    patches = jax.lax.conv_general_dilated_patches(
        x, (KH, KW), (STRIDE, STRIDE), [(PAD, PAD), (PAD, PAD)])      # (N, K1, H1, W1)
    p1 = patches.transpose(0, 2, 3, 1).reshape(N * M1B, K1)
    p1p = jnp.zeros((N * M1B, K1P), jnp.float32)
    p1p = p1p.at[:, :K1].set(p1).at[:, K1].set(1.0)                   # ones-col for b1

    # ---- pack weights / biases into padded, layout-friendly operands --------
    w1p = jnp.zeros((K1P, C1P), jnp.float32)
    w1p = w1p.at[:K1, :C1].set(w1.reshape(C1, K1).T.astype(jnp.float32))
    w1p = w1p.at[K1, :C1].set(b1.astype(jnp.float32))                 # bias row

    w2s = jnp.zeros((NTAPS, C1P, C2P), jnp.float32)
    w2s = w2s.at[:, :C1, :C2].set(
        w2.transpose(2, 3, 1, 0).reshape(NTAPS, C1, C2).astype(jnp.float32))

    b2p = jnp.zeros((1, C2P), jnp.float32).at[0, :C2].set(b2.astype(jnp.float32))

    g = jnp.asarray(_gather_matrix(H1, W1, H2, W2, KH, KW, STRIDE, PAD))

    kernel = functools.partial(_fused_encoder_kernel, n_batch=N,
                               m1b=M1B, m2b=M2B, n_taps=NTAPS)

    out2d = pl.pallas_call(
        kernel,
        out_shape=jax.ShapeDtypeStruct((N * M2B, C2P), jnp.float32),
        in_specs=[
            pl.BlockSpec((N * M1B, K1P), lambda: (0, 0)),             # patches
            pl.BlockSpec((K1P, C1P), lambda: (0, 0)),                 # w1 (+b1)
            pl.BlockSpec((NTAPS * M2B, M1B), lambda: (0, 0)),         # gather matrix
            pl.BlockSpec((NTAPS, C1P, C2P), lambda: (0, 0, 0)),       # w2 per tap
            pl.BlockSpec((1, C2P), lambda: (0, 0)),                   # b2
        ],
        out_specs=pl.BlockSpec((N * M2B, C2P), lambda: (0, 0)),
        compiler_params=pltpu.CompilerParams(vmem_limit_bytes=32 * 1024 * 1024),
    )(p1p, w1p, g, w2s, b2p)

    # drop the channel padding and restore NCHW
    return out2d[:, :C2].reshape(N, H2, W2, C2).transpose(0, 3, 1, 2)


# --------------------------------- params ------------------------------------
def init_params(key):
    """Deterministic init mirroring PyTorch Conv2d default U(-1/sqrt(fan_in), +)."""
    k1, k2, k3, k4 = jax.random.split(key, 4)

    def uinit(k, shape, fan_in):
        bound = 1.0 / np.sqrt(fan_in)
        return jax.random.uniform(k, shape, jnp.float32, -bound, bound)

    w1 = uinit(k1, (3, 1, 5, 5), 1 * 5 * 5)
    b1 = uinit(k2, (3,), 1 * 5 * 5)
    w2 = uinit(k3, (6, 3, 5, 5), 3 * 5 * 5)
    b2 = uinit(k4, (6,), 3 * 5 * 5)
    return w1, b1, w2, b2


# Pure-JAX reference (XLA conv) for a correctness check.
def _encoder_ref(x, params):
    w1, b1, w2, b2 = params

    def conv(x, w, b):
        y = jax.lax.conv_general_dilated(
            x, w, window_strides=(3, 3), padding=[(2, 2), (2, 2)],
            dimension_numbers=("NCHW", "OIHW", "NCHW"))
        return jnp.tanh(y + b[None, :, None, None])

    return conv(conv(x, w1, b1), w2, b2)


if __name__ == "__main__":
    key = jax.random.PRNGKey(0)
    kx, kp = jax.random.split(key)

    # N=2, C=1, H=W=36  ->  conv1: (2,3,12,12)  ->  conv2: (2,6,4,4)
    x = jax.random.normal(kx, (2, 1, 36, 36), dtype=jnp.float32)
    params = init_params(kp)

    out = jax.jit(encoder_forward)(x, params)
    out = jax.block_until_ready(out)
    assert out.shape == (2, 6, 4, 4), out.shape

    ref = jax.block_until_ready(_encoder_ref(x, params))
    # Tolerance kept conservative because TPU MXU f32 matmuls (DEFAULT
    # precision) may use reduced-precision passes on both sides.
    np.testing.assert_allclose(np.asarray(out), np.asarray(ref),
                               rtol=1e-2, atol=2e-3)

    print("KERNEL_OK")
</pallas_src>

<mosaic_0001>
module attributes {stable_mosaic.version = 11 : i64} {
  func.func @_fused_encoder_kernel(%arg0: memref<288x128xf32, #tpu.memory_space<vmem>>, %arg1: memref<128x8xf32, #tpu.memory_space<vmem>>, %arg2: memref<400x144xf32, #tpu.memory_space<vmem>>, %arg3: memref<25x8x128xf32, #tpu.memory_space<vmem>>, %arg4: memref<1x128xf32, #tpu.memory_space<vmem>>, %arg5: memref<32x128xf32, #tpu.memory_space<vmem>>) attributes {dimension_semantics = [], scalar_prefetch = 0 : i64, scratch_operands = 0 : i64, tpu.core_type = #tpu.core_type<tc>} {
    %c0 = arith.constant 0 : index
    %c0_0 = arith.constant 0 : index
    %0 = vector.load %arg0[%c0, %c0_0] : memref<288x128xf32, #tpu.memory_space<vmem>>, vector<288x128xf32>
    %c0_1 = arith.constant 0 : index
    %c0_2 = arith.constant 0 : index
    %1 = vector.load %arg1[%c0_1, %c0_2] : memref<128x8xf32, #tpu.memory_space<vmem>>, vector<128x8xf32>
    %cst = arith.constant dense<0.000000e+00> : vector<288x8xf32>
    %2 = tpu.matmul %0, %1, %cst {dimension_numbers = #tpu.dot_dimension_numbers<[1], [0], [0], [1], [0, 0, 1, 1], [], []>} : vector<288x128xf32>, vector<128x8xf32>, vector<288x8xf32> -> vector<288x8xf32>
    %3 = math.tanh %2 : vector<288x8xf32>
    %c0_3 = arith.constant 0 : index
    %c0_4 = arith.constant 0 : index
    %4 = vector.load %arg2[%c0_3, %c0_4] : memref<400x144xf32, #tpu.memory_space<vmem>>, vector<400x144xf32>
    %c0_5 = arith.constant 0 : index
    %c0_6 = arith.constant 0 : index
    %5 = vector.load %arg4[%c0_5, %c0_6] : memref<1x128xf32, #tpu.memory_space<vmem>>, vector<1x128xf32>
    %6 = vector.extract_strided_slice %3 {offsets = [0, 0], sizes = [144, 8], strides = [1, 1]} : vector<288x8xf32> to vector<144x8xf32>
    %cst_7 = arith.constant dense<0.000000e+00> : vector<400x8xf32>
    %7 = tpu.matmul %4, %6, %cst_7 {dimension_numbers = #tpu.dot_dimension_numbers<[1], [0], [0], [1], [0, 0, 1, 1], [], []>} : vector<400x144xf32>, vector<144x8xf32>, vector<400x8xf32> -> vector<400x8xf32>
    %cst_8 = arith.constant 0.000000e+00 : f32
    %8 = vector.broadcast %cst_8 : f32 to vector<16x128xf32>
    %9 = vector.extract_strided_slice %7 {offsets = [0, 0], sizes = [16, 8], strides = [1, 1]} : vector<400x8xf32> to vector<16x8xf32>
    %c0_9 = arith.constant 0 : index
    %c0_10 = arith.constant 0 : index
    %c0_11 = arith.constant 0 : index
    %10 = vector.load %arg3[%c0_9, %c0_10, %c0_11] : memref<25x8x128xf32, #tpu.memory_space<vmem>>, vector<1x8x128xf32>
    %11 = vector.shape_cast %10 : vector<1x8x128xf32> to vector<8x128xf32>
    %cst_12 = arith.constant dense<0.000000e+00> : vector<16x128xf32>
    %12 = tpu.matmul %9, %11, %cst_12 {dimension_numbers = #tpu.dot_dimension_numbers<[1], [0], [0], [1], [0, 0, 1, 1], [], []>} : vector<16x8xf32>, vector<8x128xf32>, vector<16x128xf32> -> vector<16x128xf32>
    %13 = arith.addf %8, %12 : vector<16x128xf32>
    %14 = vector.extract_strided_slice %7 {offsets = [16, 0], sizes = [16, 8], strides = [1, 1]} : vector<400x8xf32> to vector<16x8xf32>
    %c1 = arith.constant 1 : index
    %c0_13 = arith.constant 0 : index
    %c0_14 = arith.constant 0 : index
    %15 = vector.load %arg3[%c1, %c0_13, %c0_14] : memref<25x8x128xf32, #tpu.memory_space<vmem>>, vector<1x8x128xf32>
    %16 = vector.shape_cast %15 : vector<1x8x128xf32> to vector<8x128xf32>
    %cst_15 = arith.constant dense<0.000000e+00> : vector<16x128xf32>
    %17 = tpu.matmul %14, %16, %cst_15 {dimension_numbers = #tpu.dot_dimension_numbers<[1], [0], [0], [1], [0, 0, 1, 1], [], []>} : vector<16x8xf32>, vector<8x128xf32>, vector<16x128xf32> -> vector<16x128xf32>
    %18 = arith.addf %13, %17 : vector<16x128xf32>
    %19 = vector.extract_strided_slice %7 {offsets = [32, 0], sizes = [16, 8], strides = [1, 1]} : vector<400x8xf32> to vector<16x8xf32>
    %c2 = arith.constant 2 : index
    %c0_16 = arith.constant 0 : index
    %c0_17 = arith.constant 0 : index
    %20 = vector.load %arg3[%c2, %c0_16, %c0_17] : memref<25x8x128xf32, #tpu.memory_space<vmem>>, vector<1x8x128xf32>
    %21 = vector.shape_cast %20 : vector<1x8x128xf32> to vector<8x128xf32>
    %cst_18 = arith.constant dense<0.000000e+00> : vector<16x128xf32>
    %22 = tpu.matmul %19, %21, %cst_18 {dimension_numbers = #tpu.dot_dimension_numbers<[1], [0], [0], [1], [0, 0, 1, 1], [], []>} : vector<16x8xf32>, vector<8x128xf32>, vector<16x128xf32> -> vector<16x128xf32>
    %23 = arith.addf %18, %22 : vector<16x128xf32>
    %24 = vector.extract_strided_slice %7 {offsets = [48, 0], sizes = [16, 8], strides = [1, 1]} : vector<400x8xf32> to vector<16x8xf32>
    %c3 = arith.constant 3 : index
    %c0_19 = arith.constant 0 : index
    %c0_20 = arith.constant 0 : index
    %25 = vector.load %arg3[%c3, %c0_19, %c0_20] : memref<25x8x128xf32, #tpu.memory_space<vmem>>, vector<1x8x128xf32>
    %26 = vector.shape_cast %25 : vector<1x8x128xf32> to vector<8x128xf32>
    %cst_21 = arith.constant dense<0.000000e+00> : vector<16x128xf32>
    %27 = tpu.matmul %24, %26, %cst_21 {dimension_numbers = #tpu.dot_dimension_numbers<[1], [0], [0], [1], [0, 0, 1, 1], [], []>} : vector<16x8xf32>, vector<8x128xf32>, vector<16x128xf32> -> vector<16x128xf32>
    %28 = arith.addf %23, %27 : vector<16x128xf32>
    %29 = vector.extract_strided_slice %7 {offsets = [64, 0], sizes = [16, 8], strides = [1, 1]} : vector<400x8xf32> to vector<16x8xf32>
    %c4 = arith.constant 4 : index
    %c0_22 = arith.constant 0 : index
    %c0_23 = arith.constant 0 : index
    %30 = vector.load %arg3[%c4, %c0_22, %c0_23] : memref<25x8x128xf32, #tpu.memory_space<vmem>>, vector<1x8x128xf32>
    %31 = vector.shape_cast %30 : vector<1x8x128xf32> to vector<8x128xf32>
    %cst_24 = arith.constant dense<0.000000e+00> : vector<16x128xf32>
    %32 = tpu.matmul %29, %31, %cst_24 {dimension_numbers = #tpu.dot_dimension_numbers<[1], [0], [0], [1], [0, 0, 1, 1], [], []>} : vector<16x8xf32>, vector<8x128xf32>, vector<16x128xf32> -> vector<16x128xf32>
    %33 = arith.addf %28, %32 : vector<16x128xf32>
    %34 = vector.extract_strided_slice %7 {offsets = [80, 0], sizes = [16, 8], strides = [1, 1]} : vector<400x8xf32> to vector<16x8xf32>
    %c5 = arith.constant 5 : index
    %c0_25 = arith.constant 0 : index
    %c0_26 = arith.constant 0 : index
    %35 = vector.load %arg3[%c5, %c0_25, %c0_26] : memref<25x8x128xf32, #tpu.memory_space<vmem>>, vector<1x8x128xf32>
    %36 = vector.shape_cast %35 : vector<1x8x128xf32> to vector<8x128xf32>
    %cst_27 = arith.constant dense<0.000000e+00> : vector<16x128xf32>
    %37 = tpu.matmul %34, %36, %cst_27 {dimension_numbers = #tpu.dot_dimension_numbers<[1], [0], [0], [1], [0, 0, 1, 1], [], []>} : vector<16x8xf32>, vector<8x128xf32>, vector<16x128xf32> -> vector<16x128xf32>
    %38 = arith.addf %33, %37 : vector<16x128xf32>
    %39 = vector.extract_strided_slice %7 {offsets = [96, 0], sizes = [16, 8], strides = [1, 1]} : vector<400x8xf32> to vector<16x8xf32>
    %c6 = arith.constant 6 : index
    %c0_28 = arith.constant 0 : index
    %c0_29 = arith.constant 0 : index
    %40 = vector.load %arg3[%c6, %c0_28, %c0_29] : memref<25x8x128xf32, #tpu.memory_space<vmem>>, vector<1x8x128xf32>
    %41 = vector.shape_cast %40 : vector<1x8x128xf32> to vector<8x128xf32>
    %cst_30 = arith.constant dense<0.000000e+00> : vector<16x128xf32>
    %42 = tpu.matmul %39, %41, %cst_30 {dimension_numbers = #tpu.dot_dimension_numbers<[1], [0], [0], [1], [0, 0, 1, 1], [], []>} : vector<16x8xf32>, vector<8x128xf32>, vector<16x128xf32> -> vector<16x128xf32>
    %43 = arith.addf %38, %42 : vector<16x128xf32>
    %44 = vector.extract_strided_slice %7 {offsets = [112, 0], sizes = [16, 8], strides = [1, 1]} : vector<400x8xf32> to vector<16x8xf32>
    %c7 = arith.constant 7 : index
    %c0_31 = arith.constant 0 : index
    %c0_32 = arith.constant 0 : index
    %45 = vector.load %arg3[%c7, %c0_31, %c0_32] : memref<25x8x128xf32, #tpu.memory_space<vmem>>, vector<1x8x128xf32>
    %46 = vector.shape_cast %45 : vector<1x8x128xf32> to vector<8x128xf32>
    %cst_33 = arith.constant dense<0.000000e+00> : vector<16x128xf32>
    %47 = tpu.matmul %44, %46, %cst_33 {dimension_numbers = #tpu.dot_dimension_numbers<[1], [0], [0], [1], [0, 0, 1, 1], [], []>} : vector<16x8xf32>, vector<8x128xf32>, vector<16x128xf32> -> vector<16x128xf32>
    %48 = arith.addf %43, %47 : vector<16x128xf32>
    %49 = vector.extract_strided_slice %7 {offsets = [128, 0], sizes = [16, 8], strides = [1, 1]} : vector<400x8xf32> to vector<16x8xf32>
    %c8 = arith.constant 8 : index
    %c0_34 = arith.constant 0 : index
    %c0_35 = arith.constant 0 : index
    %50 = vector.load %arg3[%c8, %c0_34, %c0_35] : memref<25x8x128xf32, #tpu.memory_space<vmem>>, vector<1x8x128xf32>
    %51 = vector.shape_cast %50 : vector<1x8x128xf32> to vector<8x128xf32>
    %cst_36 = arith.constant dense<0.000000e+00> : vector<16x128xf32>
    %52 = tpu.matmul %49, %51, %cst_36 {dimension_numbers = #tpu.dot_dimension_numbers<[1], [0], [0], [1], [0, 0, 1, 1], [], []>} : vector<16x8xf32>, vector<8x128xf32>, vector<16x128xf32> -> vector<16x128xf32>
    %53 = arith.addf %48, %52 : vector<16x128xf32>
    %54 = vector.extract_strided_slice %7 {offsets = [144, 0], sizes = [16, 8], strides = [1, 1]} : vector<400x8xf32> to vector<16x8xf32>
    %c9 = arith.constant 9 : index
    %c0_37 = arith.constant 0 : index
    %c0_38 = arith.constant 0 : index
    %55 = vector.load %arg3[%c9, %c0_37, %c0_38] : memref<25x8x128xf32, #tpu.memory_space<vmem>>, vector<1x8x128xf32>
    %56 = vector.shape_cast %55 : vector<1x8x128xf32> to vector<8x128xf32>
    %cst_39 = arith.constant dense<0.000000e+00> : vector<16x128xf32>
    %57 = tpu.matmul %54, %56, %cst_39 {dimension_numbers = #tpu.dot_dimension_numbers<[1], [0], [0], [1], [0, 0, 1, 1], [], []>} : vector<16x8xf32>, vector<8x128xf32>, vector<16x128xf32> -> vector<16x128xf32>
    %58 = arith.addf %53, %57 : vector<16x128xf32>
    %59 = vector.extract_strided_slice %7 {offsets = [160, 0], sizes = [16, 8], strides = [1, 1]} : vector<400x8xf32> to vector<16x8xf32>
    %c10 = arith.constant 10 : index
    %c0_40 = arith.constant 0 : index
    %c0_41 = arith.constant 0 : index
    %60 = vector.load %arg3[%c10, %c0_40, %c0_41] : memref<25x8x128xf32, #tpu.memory_space<vmem>>, vector<1x8x128xf32>
    %61 = vector.shape_cast %60 : vector<1x8x128xf32> to vector<8x128xf32>
    %cst_42 = arith.constant dense<0.000000e+00> : vector<16x128xf32>
    %62 = tpu.matmul %59, %61, %cst_42 {dimension_numbers = #tpu.dot_dimension_numbers<[1], [0], [0], [1], [0, 0, 1, 1], [], []>} : vector<16x8xf32>, vector<8x128xf32>, vector<16x128xf32> -> vector<16x128xf32>
    %63 = arith.addf %58, %62 : vector<16x128xf32>
    %64 = vector.extract_strided_slice %7 {offsets = [176, 0], sizes = [16, 8], strides = [1, 1]} : vector<400x8xf32> to vector<16x8xf32>
    %c11 = arith.constant 11 : index
    %c0_43 = arith.constant 0 : index
    %c0_44 = arith.constant 0 : index
    %65 = vector.load %arg3[%c11, %c0_43, %c0_44] : memref<25x8x128xf32, #tpu.memory_space<vmem>>, vector<1x8x128xf32>
    %66 = vector.shape_cast %65 : vector<1x8x128xf32> to vector<8x128xf32>
    %cst_45 = arith.constant dense<0.000000e+00> : vector<16x128xf32>
    %67 = tpu.matmul %64, %66, %cst_45 {dimension_numbers = #tpu.dot_dimension_numbers<[1], [0], [0], [1], [0, 0, 1, 1], [], []>} : vector<16x8xf32>, vector<8x128xf32>, vector<16x128xf32> -> vector<16x128xf32>
    %68 = arith.addf %63, %67 : vector<16x128xf32>
    %69 = vector.extract_strided_slice %7 {offsets = [192, 0], sizes = [16, 8], strides = [1, 1]} : vector<400x8xf32> to vector<16x8xf32>
    %c12 = arith.constant 12 : index
    %c0_46 = arith.constant 0 : index
    %c0_47 = arith.constant 0 : index
    %70 = vector.load %arg3[%c12, %c0_46, %c0_47] : memref<25x8x128xf32, #tpu.memory_space<vmem>>, vector<1x8x128xf32>
    %71 = vector.shape_cast %70 : vector<1x8x128xf32> to vector<8x128xf32>
    %cst_48 = arith.constant dense<0.000000e+00> : vector<16x128xf32>
    %72 = tpu.matmul %69, %71, %cst_48 {dimension_numbers = #tpu.dot_dimension_numbers<[1], [0], [0], [1], [0, 0, 1, 1], [], []>} : vector<16x8xf32>, vector<8x128xf32>, vector<16x128xf32> -> vector<16x128xf32>
    %73 = arith.addf %68, %72 : vector<16x128xf32>
    %74 = vector.extract_strided_slice %7 {offsets = [208, 0], sizes = [16, 8], strides = [1, 1]} : vector<400x8xf32> to vector<16x8xf32>
    %c13 = arith.constant 13 : index
    %c0_49 = arith.constant 0 : index
    %c0_50 = arith.constant 0 : index
    %75 = vector.load %arg3[%c13, %c0_49, %c0_50] : memref<25x8x128xf32, #tpu.memory_space<vmem>>, vector<1x8x128xf32>
    %76 = vector.shape_cast %75 : vector<1x8x128xf32> to vector<8x128xf32>
    %cst_51 = arith.constant dense<0.000000e+00> : vector<16x128xf32>
    %77 = tpu.matmul %74, %76, %cst_51 {dimension_numbers = #tpu.dot_dimension_numbers<[1], [0], [0], [1], [0, 0, 1, 1], [], []>} : vector<16x8xf32>, vector<8x128xf32>, vector<16x128xf32> -> vector<16x128xf32>
    %78 = arith.addf %73, %77 : vector<16x128xf32>
    %79 = vector.extract_strided_slice %7 {offsets = [224, 0], sizes = [16, 8], strides = [1, 1]} : vector<400x8xf32> to vector<16x8xf32>
    %c14 = arith.constant 14 : index
    %c0_52 = arith.constant 0 : index
    %c0_53 = arith.constant 0 : index
    %80 = vector.load %arg3[%c14, %c0_52, %c0_53] : memref<25x8x128xf32, #tpu.memory_space<vmem>>, vector<1x8x128xf32>
    %81 = vector.shape_cast %80 : vector<1x8x128xf32> to vector<8x128xf32>
    %cst_54 = arith.constant dense<0.000000e+00> : vector<16x128xf32>
    %82 = tpu.matmul %79, %81, %cst_54 {dimension_numbers = #tpu.dot_dimension_numbers<[1], [0], [0], [1], [0, 0, 1, 1], [], []>} : vector<16x8xf32>, vector<8x128xf32>, vector<16x128xf32> -> vector<16x128xf32>
    %83 = arith.addf %78, %82 : vector<16x128xf32>
    %84 = vector.extract_strided_slice %7 {offsets = [240, 0], sizes = [16, 8], strides = [1, 1]} : vector<400x8xf32> to vector<16x8xf32>
    %c15 = arith.constant 15 : index
    %c0_55 = arith.constant 0 : index
    %c0_56 = arith.constant 0 : index
    %85 = vector.load %arg3[%c15, %c0_55, %c0_56] : memref<25x8x128xf32, #tpu.memory_space<vmem>>, vector<1x8x128xf32>
    %86 = vector.shape_cast %85 : vector<1x8x128xf32> to vector<8x128xf32>
    %cst_57 = arith.constant dense<0.000000e+00> : vector<16x128xf32>
    %87 = tpu.matmul %84, %86, %cst_57 {dimension_numbers = #tpu.dot_dimension_numbers<[1], [0], [0], [1], [0, 0, 1, 1], [], []>} : vector<16x8xf32>, vector<8x128xf32>, vector<16x128xf32> -> vector<16x128xf32>
    %88 = arith.addf %83, %87 : vector<16x128xf32>
    %89 = vector.extract_strided_slice %7 {offsets = [256, 0], sizes = [16, 8], strides = [1, 1]} : vector<400x8xf32> to vector<16x8xf32>
    %c16 = arith.constant 16 : index
    %c0_58 = arith.constant 0 : index
    %c0_59 = arith.constant 0 : index
    %90 = vector.load %arg3[%c16, %c0_58, %c0_59] : memref<25x8x128xf32, #tpu.memory_space<vmem>>, vector<1x8x128xf32>
    %91 = vector.shape_cast %90 : vector<1x8x128xf32> to vector<8x128xf32>
    %cst_60 = arith.constant dense<0.000000e+00> : vector<16x128xf32>
    %92 = tpu.matmul %89, %91, %cst_60 {dimension_numbers = #tpu.dot_dimension_numbers<[1], [0], [0], [1], [0, 0, 1, 1], [], []>} : vector<16x8xf32>, vector<8x128xf32>, vector<16x128xf32> -> vector<16x128xf32>
    %93 = arith.addf %88, %92 : vector<16x128xf32>
    %94 = vector.extract_strided_slice %7 {offsets = [272, 0], sizes = [16, 8], strides = [1, 1]} : vector<400x8xf32> to vector<16x8xf32>
    %c17 = arith.constant 17 : index
    %c0_61 = arith.constant 0 : index
    %c0_62 = arith.constant 0 : index
    %95 = vector.load %arg3[%c17, %c0_61, %c0_62] : memref<25x8x128xf32, #tpu.memory_space<vmem>>, vector<1x8x128xf32>
    %96 = vector.shape_cast %95 : vector<1x8x128xf32> to vector<8x128xf32>
    %cst_63 = arith.constant dense<0.000000e+00> : vector<16x128xf32>
    %97 = tpu.matmul %94, %96, %cst_63 {dimension_numbers = #tpu.dot_dimension_numbers<[1], [0], [0], [1], [0, 0, 1, 1], [], []>} : vector<16x8xf32>, vector<8x128xf32>, vector<16x128xf32> -> vector<16x128xf32>
    %98 = arith.addf %93, %97 : vector<16x128xf32>
    %99 = vector.extract_strided_slice %7 {offsets = [288, 0], sizes = [16, 8], strides = [1, 1]} : vector<400x8xf32> to vector<16x8xf32>
    %c18 = arith.constant 18 : index
    %c0_64 = arith.constant 0 : index
    %c0_65 = arith.constant 0 : index
    %100 = vector.load %arg3[%c18, %c0_64, %c0_65] : memref<25x8x128xf32, #tpu.memory_space<vmem>>, vector<1x8x128xf32>
    %101 = vector.shape_cast %100 : vector<1x8x128xf32> to vector<8x128xf32>
    %cst_66 = arith.constant dense<0.000000e+00> : vector<16x128xf32>
    %102 = tpu.matmul %99, %101, %cst_66 {dimension_numbers = #tpu.dot_dimension_numbers<[1], [0], [0], [1], [0, 0, 1, 1], [], []>} : vector<16x8xf32>, vector<8x128xf32>, vector<16x128xf32> -> vector<16x128xf32>
    %103 = arith.addf %98, %102 : vector<16x128xf32>
    %104 = vector.extract_strided_slice %7 {offsets = [304, 0], sizes = [16, 8], strides = [1, 1]} : vector<400x8xf32> to vector<16x8xf32>
    %c19 = arith.constant 19 : index
    %c0_67 = arith.constant 0 : index
    %c0_68 = arith.constant 0 : index
    %105 = vector.load %arg3[%c19, %c0_67, %c0_68] : memref<25x8x128xf32, #tpu.memory_space<vmem>>, vector<1x8x128xf32>
    %106 = vector.shape_cast %105 : vector<1x8x128xf32> to vector<8x128xf32>
    %cst_69 = arith.constant dense<0.000000e+00> : vector<16x128xf32>
    %107 = tpu.matmul %104, %106, %cst_69 {dimension_numbers = #tpu.dot_dimension_numbers<[1], [0], [0], [1], [0, 0, 1, 1], [], []>} : vector<16x8xf32>, vector<8x128xf32>, vector<16x128xf32> -> vector<16x128xf32>
    %108 = arith.addf %103, %107 : vector<16x128xf32>
    %109 = vector.extract_strided_slice %7 {offsets = [320, 0], sizes = [16, 8], strides = [1, 1]} : vector<400x8xf32> to vector<16x8xf32>
    %c20 = arith.constant 20 : index
    %c0_70 = arith.constant 0 : index
    %c0_71 = arith.constant 0 : index
    %110 = vector.load %arg3[%c20, %c0_70, %c0_71] : memref<25x8x128xf32, #tpu.memory_space<vmem>>, vector<1x8x128xf32>
    %111 = vector.shape_cast %110 : vector<1x8x128xf32> to vector<8x128xf32>
    %cst_72 = arith.constant dense<0.000000e+00> : vector<16x128xf32>
    %112 = tpu.matmul %109, %111, %cst_72 {dimension_numbers = #tpu.dot_dimension_numbers<[1], [0], [0], [1], [0, 0, 1, 1], [], []>} : vector<16x8xf32>, vector<8x128xf32>, vector<16x128xf32> -> vector<16x128xf32>
    %113 = arith.addf %108, %112 : vector<16x128xf32>
    %114 = vector.extract_strided_slice %7 {offsets = [336, 0], sizes = [16, 8], strides = [1, 1]} : vector<400x8xf32> to vector<16x8xf32>
    %c21 = arith.constant 21 : index
    %c0_73 = arith.constant 0 : index
    %c0_74 = arith.constant 0 : index
    %115 = vector.load %arg3[%c21, %c0_73, %c0_74] : memref<25x8x128xf32, #tpu.memory_space<vmem>>, vector<1x8x128xf32>
    %116 = vector.shape_cast %115 : vector<1x8x128xf32> to vector<8x128xf32>
    %cst_75 = arith.constant dense<0.000000e+00> : vector<16x128xf32>
    %117 = tpu.matmul %114, %116, %cst_75 {dimension_numbers = #tpu.dot_dimension_numbers<[1], [0], [0], [1], [0, 0, 1, 1], [], []>} : vector<16x8xf32>, vector<8x128xf32>, vector<16x128xf32> -> vector<16x128xf32>
    %118 = arith.addf %113, %117 : vector<16x128xf32>
    %119 = vector.extract_strided_slice %7 {offsets = [352, 0], sizes = [16, 8], strides = [1, 1]} : vector<400x8xf32> to vector<16x8xf32>
    %c22 = arith.constant 22 : index
    %c0_76 = arith.constant 0 : index
    %c0_77 = arith.constant 0 : index
    %120 = vector.load %arg3[%c22, %c0_76, %c0_77] : memref<25x8x128xf32, #tpu.memory_space<vmem>>, vector<1x8x128xf32>
    %121 = vector.shape_cast %120 : vector<1x8x128xf32> to vector<8x128xf32>
    %cst_78 = arith.constant dense<0.000000e+00> : vector<16x128xf32>
    %122 = tpu.matmul %119, %121, %cst_78 {dimension_numbers = #tpu.dot_dimension_numbers<[1], [0], [0], [1], [0, 0, 1, 1], [], []>} : vector<16x8xf32>, vector<8x128xf32>, vector<16x128xf32> -> vector<16x128xf32>
    %123 = arith.addf %118, %122 : vector<16x128xf32>
    %124 = vector.extract_strided_slice %7 {offsets = [368, 0], sizes = [16, 8], strides = [1, 1]} : vector<400x8xf32> to vector<16x8xf32>
    %c23 = arith.constant 23 : index
    %c0_79 = arith.constant 0 : index
    %c0_80 = arith.constant 0 : index
    %125 = vector.load %arg3[%c23, %c0_79, %c0_80] : memref<25x8x128xf32, #tpu.memory_space<vmem>>, vector<1x8x128xf32>
    %126 = vector.shape_cast %125 : vector<1x8x128xf32> to vector<8x128xf32>
    %cst_81 = arith.constant dense<0.000000e+00> : vector<16x128xf32>
    %127 = tpu.matmul %124, %126, %cst_81 {dimension_numbers = #tpu.dot_dimension_numbers<[1], [0], [0], [1], [0, 0, 1, 1], [], []>} : vector<16x8xf32>, vector<8x128xf32>, vector<16x128xf32> -> vector<16x128xf32>
    %128 = arith.addf %123, %127 : vector<16x128xf32>
    %129 = vector.extract_strided_slice %7 {offsets = [384, 0], sizes = [16, 8], strides = [1, 1]} : vector<400x8xf32> to vector<16x8xf32>
    %c24 = arith.constant 24 : index
    %c0_82 = arith.constant 0 : index
    %c0_83 = arith.constant 0 : index
    %130 = vector.load %arg3[%c24, %c0_82, %c0_83] : memref<25x8x128xf32, #tpu.memory_space<vmem>>, vector<1x8x128xf32>
    %131 = vector.shape_cast %130 : vector<1x8x128xf32> to vector<8x128xf32>
    %cst_84 = arith.constant dense<0.000000e+00> : vector<16x128xf32>
    %132 = tpu.matmul %129, %131, %cst_84 {dimension_numbers = #tpu.dot_dimension_numbers<[1], [0], [0], [1], [0, 0, 1, 1], [], []>} : vector<16x8xf32>, vector<8x128xf32>, vector<16x128xf32> -> vector<16x128xf32>
    %133 = arith.addf %128, %132 : vector<16x128xf32>
    %134 = vector.broadcast %5 : vector<1x128xf32> to vector<16x128xf32>
    %135 = arith.addf %133, %134 : vector<16x128xf32>
    %136 = math.tanh %135 : vector<16x128xf32>
    %c0_85 = arith.constant 0 : index
    %c0_86 = arith.constant 0 : index
    %137 = vector.load %arg5[%c0_85, %c0_86] : memref<32x128xf32, #tpu.memory_space<vmem>>, vector<16x128xf32>
    tpu.vector_store %arg5[%c0_85, %c0_86], %136 {strides = array<i32>} : memref<32x128xf32, #tpu.memory_space<vmem>>, vector<16x128xf32>,
    %138 = vector.extract_strided_slice %3 {offsets = [144, 0], sizes = [144, 8], strides = [1, 1]} : vector<288x8xf32> to vector<144x8xf32>
    %cst_87 = arith.constant dense<0.000000e+00> : vector<400x8xf32>
    %139 = tpu.matmul %4, %138, %cst_87 {dimension_numbers = #tpu.dot_dimension_numbers<[1], [0], [0], [1], [0, 0, 1, 1], [], []>} : vector<400x144xf32>, vector<144x8xf32>, vector<400x8xf32> -> vector<400x8xf32>
    %cst_88 = arith.constant 0.000000e+00 : f32
    %140 = vector.broadcast %cst_88 : f32 to vector<16x128xf32>
    %141 = vector.extract_strided_slice %139 {offsets = [0, 0], sizes = [16, 8], strides = [1, 1]} : vector<400x8xf32> to vector<16x8xf32>
    %c0_89 = arith.constant 0 : index
    %c0_90 = arith.constant 0 : index
    %c0_91 = arith.constant 0 : index
    %142 = vector.load %arg3[%c0_89, %c0_90, %c0_91] : memref<25x8x128xf32, #tpu.memory_space<vmem>>, vector<1x8x128xf32>
    %143 = vector.shape_cast %142 : vector<1x8x128xf32> to vector<8x128xf32>
    %cst_92 = arith.constant dense<0.000000e+00> : vector<16x128xf32>
    %144 = tpu.matmul %141, %143, %cst_92 {dimension_numbers = #tpu.dot_dimension_numbers<[1], [0], [0], [1], [0, 0, 1, 1], [], []>} : vector<16x8xf32>, vector<8x128xf32>, vector<16x128xf32> -> vector<16x128xf32>
    %145 = arith.addf %140, %144 : vector<16x128xf32>
    %146 = vector.extract_strided_slice %139 {offsets = [16, 0], sizes = [16, 8], strides = [1, 1]} : vector<400x8xf32> to vector<16x8xf32>
    %c1_93 = arith.constant 1 : index
    %c0_94 = arith.constant 0 : index
    %c0_95 = arith.constant 0 : index
    %147 = vector.load %arg3[%c1_93, %c0_94, %c0_95] : memref<25x8x128xf32, #tpu.memory_space<vmem>>, vector<1x8x128xf32>
    %148 = vector.shape_cast %147 : vector<1x8x128xf32> to vector<8x128xf32>
    %cst_96 = arith.constant dense<0.000000e+00> : vector<16x128xf32>
    %149 = tpu.matmul %146, %148, %cst_96 {dimension_numbers = #tpu.dot_dimension_numbers<[1], [0], [0], [1], [0, 0, 1, 1], [], []>} : vector<16x8xf32>, vector<8x128xf32>, vector<16x128xf32> -> vector<16x128xf32>
    %150 = arith.addf %145, %149 : vector<16x128xf32>
    %151 = vector.extract_strided_slice %139 {offsets = [32, 0], sizes = [16, 8], strides = [1, 1]} : vector<400x8xf32> to vector<16x8xf32>
    %c2_97 = arith.constant 2 : index
    %c0_98 = arith.constant 0 : index
    %c0_99 = arith.constant 0 : index
    %152 = vector.load %arg3[%c2_97, %c0_98, %c0_99] : memref<25x8x128xf32, #tpu.memory_space<vmem>>, vector<1x8x128xf32>
    %153 = vector.shape_cast %152 : vector<1x8x128xf32> to vector<8x128xf32>
    %cst_100 = arith.constant dense<0.000000e+00> : vector<16x128xf32>
    %154 = tpu.matmul %151, %153, %cst_100 {dimension_numbers = #tpu.dot_dimension_numbers<[1], [0], [0], [1], [0, 0, 1, 1], [], []>} : vector<16x8xf32>, vector<8x128xf32>, vector<16x128xf32> -> vector<16x128xf32>
    %155 = arith.addf %150, %154 : vector<16x128xf32>
    %156 = vector.extract_strided_slice %139 {offsets = [48, 0], sizes = [16, 8], strides = [1, 1]} : vector<400x8xf32> to vector<16x8xf32>
    %c3_101 = arith.constant 3 : index
    %c0_102 = arith.constant 0 : index
    %c0_103 = arith.constant 0 : index
    %157 = vector.load %arg3[%c3_101, %c0_102, %c0_103] : memref<25x8x128xf32, #tpu.memory_space<vmem>>, vector<1x8x128xf32>
    %158 = vector.shape_cast %157 : vector<1x8x128xf32> to vector<8x128xf32>
    %cst_104 = arith.constant dense<0.000000e+00> : vector<16x128xf32>
    %159 = tpu.matmul %156, %158, %cst_104 {dimension_numbers = #tpu.dot_dimension_numbers<[1], [0], [0], [1], [0, 0, 1, 1], [], []>} : vector<16x8xf32>, vector<8x128xf32>, vector<16x128xf32> -> vector<16x128xf32>
    %160 = arith.addf %155, %159 : vector<16x128xf32>
    %161 = vector.extract_strided_slice %139 {offsets = [64, 0], sizes = [16, 8], strides = [1, 1]} : vector<400x8xf32> to vector<16x8xf32>
    %c4_105 = arith.constant 4 : index
    %c0_106 = arith.constant 0 : index
    %c0_107 = arith.constant 0 : index
    %162 = vector.load %arg3[%c4_105, %c0_106, %c0_107] : memref<25x8x128xf32, #tpu.memory_space<vmem>>, vector<1x8x128xf32>
    %163 = vector.shape_cast %162 : vector<1x8x128xf32> to vector<8x128xf32>
    %cst_108 = arith.constant dense<0.000000e+00> : vector<16x128xf32>
    %164 = tpu.matmul %161, %163, %cst_108 {dimension_numbers = #tpu.dot_dimension_numbers<[1], [0], [0], [1], [0, 0, 1, 1], [], []>} : vector<16x8xf32>, vector<8x128xf32>, vector<16x128xf32> -> vector<16x128xf32>
    %165 = arith.addf %160, %164 : vector<16x128xf32>
    %166 = vector.extract_strided_slice %139 {offsets = [80, 0], sizes = [16, 8], strides = [1, 1]} : vector<400x8xf32> to vector<16x8xf32>
    %c5_109 = arith.constant 5 : index
    %c0_110 = arith.constant 0 : index
    %c0_111 = arith.constant 0 : index
    %167 = vector.load %arg3[%c5_109, %c0_110, %c0_111] : memref<25x8x128xf32, #tpu.memory_space<vmem>>, vector<1x8x128xf32>
    %168 = vector.shape_cast %167 : vector<1x8x128xf32> to vector<8x128xf32>
    %cst_112 = arith.constant dense<0.000000e+00> : vector<16x128xf32>
    %169 = tpu.matmul %166, %168, %cst_112 {dimension_numbers = #tpu.dot_dimension_numbers<[1], [0], [0], [1], [0, 0, 1, 1], [], []>} : vector<16x8xf32>, vector<8x128xf32>, vector<16x128xf32> -> vector<16x128xf32>
    %170 = arith.addf %165, %169 : vector<16x128xf32>
    %171 = vector.extract_strided_slice %139 {offsets = [96, 0], sizes = [16, 8], strides = [1, 1]} : vector<400x8xf32> to vector<16x8xf32>
    %c6_113 = arith.constant 6 : index
    %c0_114 = arith.constant 0 : index
    %c0_115 = arith.constant 0 : index
    %172 = vector.load %arg3[%c6_113, %c0_114, %c0_115] : memref<25x8x128xf32, #tpu.memory_space<vmem>>, vector<1x8x128xf32>
    %173 = vector.shape_cast %172 : vector<1x8x128xf32> to vector<8x128xf32>
    %cst_116 = arith.constant dense<0.000000e+00> : vector<16x128xf32>
    %174 = tpu.matmul %171, %173, %cst_116 {dimension_numbers = #tpu.dot_dimension_numbers<[1], [0], [0], [1], [0, 0, 1, 1], [], []>} : vector<16x8xf32>, vector<8x128xf32>, vector<16x128xf32> -> vector<16x128xf32>
    %175 = arith.addf %170, %174 : vector<16x128xf32>
    %176 = vector.extract_strided_slice %139 {offsets = [112, 0], sizes = [16, 8], strides = [1, 1]} : vector<400x8xf32> to vector<16x8xf32>
    %c7_117 = arith.constant 7 : index
    %c0_118 = arith.constant 0 : index
    %c0_119 = arith.constant 0 : index
    %177 = vector.load %arg3[%c7_117, %c0_118, %c0_119] : memref<25x8x128xf32, #tpu.memory_space<vmem>>, vector<1x8x128xf32>
    %178 = vector.shape_cast %177 : vector<1x8x128xf32> to vector<8x128xf32>
    %cst_120 = arith.constant dense<0.000000e+00> : vector<16x128xf32>
    %179 = tpu.matmul %176, %178, %cst_120 {dimension_numbers = #tpu.dot_dimension_numbers<[1], [0], [0], [1], [0, 0, 1, 1], [], []>} : vector<16x8xf32>, vector<8x128xf32>, vector<16x128xf32> -> vector<16x128xf32>
    %180 = arith.addf %175, %179 : vector<16x128xf32>
    %181 = vector.extract_strided_slice %139 {offsets = [128, 0], sizes = [16, 8], strides = [1, 1]} : vector<400x8xf32> to vector<16x8xf32>
    %c8_121 = arith.constant 8 : index
    %c0_122 = arith.constant 0 : index
    %c0_123 = arith.constant 0 : index
    %182 = vector.load %arg3[%c8_121, %c0_122, %c0_123] : memref<25x8x128xf32, #tpu.memory_space<vmem>>, vector<1x8x128xf32>
    %183 = vector.shape_cast %182 : vector<1x8x128xf32> to vector<8x128xf32>
    %cst_124 = arith.constant dense<0.000000e+00> : vector<16x128xf32>
    %184 = tpu.matmul %181, %183, %cst_124 {dimension_numbers = #tpu.dot_dimension_numbers<[1], [0], [0], [1], [0, 0, 1, 1], [], []>} : vector<16x8xf32>, vector<8x128xf32>, vector<16x128xf32> -> vector<16x128xf32>
    %185 = arith.addf %180, %184 : vector<16x128xf32>
    %186 = vector.extract_strided_slice %139 {offsets = [144, 0], sizes = [16, 8], strides = [1, 1]} : vector<400x8xf32> to vector<16x8xf32>
    %c9_125 = arith.constant 9 : index
    %c0_126 = arith.constant 0 : index
    %c0_127 = arith.constant 0 : index
    %187 = vector.load %arg3[%c9_125, %c0_126, %c0_127] : memref<25x8x128xf32, #tpu.memory_space<vmem>>, vector<1x8x128xf32>
    %188 = vector.shape_cast %187 : vector<1x8x128xf32> to vector<8x128xf32>
    %cst_128 = arith.constant dense<0.000000e+00> : vector<16x128xf32>
    %189 = tpu.matmul %186, %188, %cst_128 {dimension_numbers = #tpu.dot_dimension_numbers<[1], [0], [0], [1], [0, 0, 1, 1], [], []>} : vector<16x8xf32>, vector<8x128xf32>, vector<16x128xf32> -> vector<16x128xf32>
    %190 = arith.addf %185, %189 : vector<16x128xf32>
    %191 = vector.extract_strided_slice %139 {offsets = [160, 0], sizes = [16, 8], strides = [1, 1]} : vector<400x8xf32> to vector<16x8xf32>
    %c10_129 = arith.constant 10 : index
    %c0_130 = arith.constant 0 : index
    %c0_131 = arith.constant 0 : index
    %192 = vector.load %arg3[%c10_129, %c0_130, %c0_131] : memref<25x8x128xf32, #tpu.memory_space<vmem>>, vector<1x8x128xf32>
    %193 = vector.shape_cast %192 : vector<1x8x128xf32> to vector<8x128xf32>
    %cst_132 = arith.constant dense<0.000000e+00> : vector<16x128xf32>
    %194 = tpu.matmul %191, %193, %cst_132 {dimension_numbers = #tpu.dot_dimension_numbers<[1], [0], [0], [1], [0, 0, 1, 1], [], []>} : vector<16x8xf32>, vector<8x128xf32>, vector<16x128xf32> -> vector<16x128xf32>
    %195 = arith.addf %190, %194 : vector<16x128xf32>
    %196 = vector.extract_strided_slice %139 {offsets = [176, 0], sizes = [16, 8], strides = [1, 1]} : vector<400x8xf32> to vector<16x8xf32>
    %c11_133 = arith.constant 11 : index
    %c0_134 = arith.constant 0 : index
    %c0_135 = arith.constant 0 : index
    %197 = vector.load %arg3[%c11_133, %c0_134, %c0_135] : memref<25x8x128xf32, #tpu.memory_space<vmem>>, vector<1x8x128xf32>
    %198 = vector.shape_cast %197 : vector<1x8x128xf32> to vector<8x128xf32>
    %cst_136 = arith.constant dense<0.000000e+00> : vector<16x128xf32>
    %199 = tpu.matmul %196, %198, %cst_136 {dimension_numbers = #tpu.dot_dimension_numbers<[1], [0], [0], [1], [0, 0, 1, 1], [], []>} : vector<16x8xf32>, vector<8x128xf32>, vector<16x128xf32> -> vector<16x128xf32>
    %200 = arith.addf %195, %199 : vector<16x128xf32>
    %201 = vector.extract_strided_slice %139 {offsets = [192, 0], sizes = [16, 8], strides = [1, 1]} : vector<400x8xf32> to vector<16x8xf32>
    %c12_137 = arith.constant 12 : index
    %c0_138 = arith.constant 0 : index
    %c0_139 = arith.constant 0 : index
    %202 = vector.load %arg3[%c12_137, %c0_138, %c0_139] : memref<25x8x128xf32, #tpu.memory_space<vmem>>, vector<1x8x128xf32>
    %203 = vector.shape_cast %202 : vector<1x8x128xf32> to vector<8x128xf32>
    %cst_140 = arith.constant dense<0.000000e+00> : vector<16x128xf32>
    %204 = tpu.matmul %201, %203, %cst_140 {dimension_numbers = #tpu.dot_dimension_numbers<[1], [0], [0], [1], [0, 0, 1, 1], [], []>} : vector<16x8xf32>, vector<8x128xf32>, vector<16x128xf32> -> vector<16x128xf32>
    %205 = arith.addf %200, %204 : vector<16x128xf32>
    %206 = vector.extract_strided_slice %139 {offsets = [208, 0], sizes = [16, 8], strides = [1, 1]} : vector<400x8xf32> to vector<16x8xf32>
    %c13_141 = arith.constant 13 : index
    %c0_142 = arith.constant 0 : index
    %c0_143 = arith.constant 0 : index
    %207 = vector.load %arg3[%c13_141, %c0_142, %c0_143] : memref<25x8x128xf32, #tpu.memory_space<vmem>>, vector<1x8x128xf32>
    %208 = vector.shape_cast %207 : vector<1x8x128xf32> to vector<8x128xf32>
    %cst_144 = arith.constant dense<0.000000e+00> : vector<16x128xf32>
    %209 = tpu.matmul %206, %208, %cst_144 {dimension_numbers = #tpu.dot_dimension_numbers<[1], [0], [0], [1], [0, 0, 1, 1], [], []>} : vector<16x8xf32>, vector<8x128xf32>, vector<16x128xf32> -> vector<16x128xf32>
    %210 = arith.addf %205, %209 : vector<16x128xf32>
    %211 = vector.extract_strided_slice %139 {offsets = [224, 0], sizes = [16, 8], strides = [1, 1]} : vector<400x8xf32> to vector<16x8xf32>
    %c14_145 = arith.constant 14 : index
    %c0_146 = arith.constant 0 : index
    %c0_147 = arith.constant 0 : index
    %212 = vector.load %arg3[%c14_145, %c0_146, %c0_147] : memref<25x8x128xf32, #tpu.memory_space<vmem>>, vector<1x8x128xf32>
    %213 = vector.shape_cast %212 : vector<1x8x128xf32> to vector<8x128xf32>
    %cst_148 = arith.constant dense<0.000000e+00> : vector<16x128xf32>
    %214 = tpu.matmul %211, %213, %cst_148 {dimension_numbers = #tpu.dot_dimension_numbers<[1], [0], [0], [1], [0, 0, 1, 1], [], []>} : vector<16x8xf32>, vector<8x128xf32>, vector<16x128xf32> -> vector<16x128xf32>
    %215 = arith.addf %210, %214 : vector<16x128xf32>
    %216 = vector.extract_strided_slice %139 {offsets = [240, 0], sizes = [16, 8], strides = [1, 1]} : vector<400x8xf32> to vector<16x8xf32>
    %c15_149 = arith.constant 15 : index
    %c0_150 = arith.constant 0 : index
    %c0_151 = arith.constant 0 : index
    %217 = vector.load %arg3[%c15_149, %c0_150, %c0_151] : memref<25x8x128xf32, #tpu.memory_space<vmem>>, vector<1x8x128xf32>
    %218 = vector.shape_cast %217 : vector<1x8x128xf32> to vector<8x128xf32>
    %cst_152 = arith.constant dense<0.000000e+00> : vector<16x128xf32>
    %219 = tpu.matmul %216, %218, %cst_152 {dimension_numbers = #tpu.dot_dimension_numbers<[1], [0], [0], [1], [0, 0, 1, 1], [], []>} : vector<16x8xf32>, vector<8x128xf32>, vector<16x128xf32> -> vector<16x128xf32>
    %220 = arith.addf %215, %219 : vector<16x128xf32>
    %221 = vector.extract_strided_slice %139 {offsets = [256, 0], sizes = [16, 8], strides = [1, 1]} : vector<400x8xf32> to vector<16x8xf32>
    %c16_153 = arith.constant 16 : index
    %c0_154 = arith.constant 0 : index
    %c0_155 = arith.constant 0 : index
    %222 = vector.load %arg3[%c16_153, %c0_154, %c0_155] : memref<25x8x128xf32, #tpu.memory_space<vmem>>, vector<1x8x128xf32>
    %223 = vector.shape_cast %222 : vector<1x8x128xf32> to vector<8x128xf32>
    %cst_156 = arith.constant dense<0.000000e+00> : vector<16x128xf32>
    %224 = tpu.matmul %221, %223, %cst_156 {dimension_numbers = #tpu.dot_dimension_numbers<[1], [0], [0], [1], [0, 0, 1, 1], [], []>} : vector<16x8xf32>, vector<8x128xf32>, vector<16x128xf32> -> vector<16x128xf32>
    %225 = arith.addf %220, %224 : vector<16x128xf32>
    %226 = vector.extract_strided_slice %139 {offsets = [272, 0], sizes = [16, 8], strides = [1, 1]} : vector<400x8xf32> to vector<16x8xf32>
    %c17_157 = arith.constant 17 : index
    %c0_158 = arith.constant 0 : index
    %c0_159 = arith.constant 0 : index
    %227 = vector.load %arg3[%c17_157, %c0_158, %c0_159] : memref<25x8x128xf32, #tpu.memory_space<vmem>>, vector<1x8x128xf32>
    %228 = vector.shape_cast %227 : vector<1x8x128xf32> to vector<8x128xf32>
    %cst_160 = arith.constant dense<0.000000e+00> : vector<16x128xf32>
    %229 = tpu.matmul %226, %228, %cst_160 {dimension_numbers = #tpu.dot_dimension_numbers<[1], [0], [0], [1], [0, 0, 1, 1], [], []>} : vector<16x8xf32>, vector<8x128xf32>, vector<16x128xf32> -> vector<16x128xf32>
    %230 = arith.addf %225, %229 : vector<16x128xf32>
    %231 = vector.extract_strided_slice %139 {offsets = [288, 0], sizes = [16, 8], strides = [1, 1]} : vector<400x8xf32> to vector<16x8xf32>
    %c18_161 = arith.constant 18 : index
    %c0_162 = arith.constant 0 : index
    %c0_163 = arith.constant 0 : index
    %232 = vector.load %arg3[%c18_161, %c0_162, %c0_163] : memref<25x8x128xf32, #tpu.memory_space<vmem>>, vector<1x8x128xf32>
    %233 = vector.shape_cast %232 : vector<1x8x128xf32> to vector<8x128xf32>
    %cst_164 = arith.constant dense<0.000000e+00> : vector<16x128xf32>
    %234 = tpu.matmul %231, %233, %cst_164 {dimension_numbers = #tpu.dot_dimension_numbers<[1], [0], [0], [1], [0, 0, 1, 1], [], []>} : vector<16x8xf32>, vector<8x128xf32>, vector<16x128xf32> -> vector<16x128xf32>
    %235 = arith.addf %230, %234 : vector<16x128xf32>
    %236 = vector.extract_strided_slice %139 {offsets = [304, 0], sizes = [16, 8], strides = [1, 1]} : vector<400x8xf32> to vector<16x8xf32>
    %c19_165 = arith.constant 19 : index
    %c0_166 = arith.constant 0 : index
    %c0_167 = arith.constant 0 : index
    %237 = vector.load %arg3[%c19_165, %c0_166, %c0_167] : memref<25x8x128xf32, #tpu.memory_space<vmem>>, vector<1x8x128xf32>
    %238 = vector.shape_cast %237 : vector<1x8x128xf32> to vector<8x128xf32>
    %cst_168 = arith.constant dense<0.000000e+00> : vector<16x128xf32>
    %239 = tpu.matmul %236, %238, %cst_168 {dimension_numbers = #tpu.dot_dimension_numbers<[1], [0], [0], [1], [0, 0, 1, 1], [], []>} : vector<16x8xf32>, vector<8x128xf32>, vector<16x128xf32> -> vector<16x128xf32>
    %240 = arith.addf %235, %239 : vector<16x128xf32>
    %241 = vector.extract_strided_slice %139 {offsets = [320, 0], sizes = [16, 8], strides = [1, 1]} : vector<400x8xf32> to vector<16x8xf32>
    %c20_169 = arith.constant 20 : index
    %c0_170 = arith.constant 0 : index
    %c0_171 = arith.constant 0 : index
    %242 = vector.load %arg3[%c20_169, %c0_170, %c0_171] : memref<25x8x128xf32, #tpu.memory_space<vmem>>, vector<1x8x128xf32>
    %243 = vector.shape_cast %242 : vector<1x8x128xf32> to vector<8x128xf32>
    %cst_172 = arith.constant dense<0.000000e+00> : vector<16x128xf32>
    %244 = tpu.matmul %241, %243, %cst_172 {dimension_numbers = #tpu.dot_dimension_numbers<[1], [0], [0], [1], [0, 0, 1, 1], [], []>} : vector<16x8xf32>, vector<8x128xf32>, vector<16x128xf32> -> vector<16x128xf32>
    %245 = arith.addf %240, %244 : vector<16x128xf32>
    %246 = vector.extract_strided_slice %139 {offsets = [336, 0], sizes = [16, 8], strides = [1, 1]} : vector<400x8xf32> to vector<16x8xf32>
    %c21_173 = arith.constant 21 : index
    %c0_174 = arith.constant 0 : index
    %c0_175 = arith.constant 0 : index
    %247 = vector.load %arg3[%c21_173, %c0_174, %c0_175] : memref<25x8x128xf32, #tpu.memory_space<vmem>>, vector<1x8x128xf32>
    %248 = vector.shape_cast %247 : vector<1x8x128xf32> to vector<8x128xf32>
    %cst_176 = arith.constant dense<0.000000e+00> : vector<16x128xf32>
    %249 = tpu.matmul %246, %248, %cst_176 {dimension_numbers = #tpu.dot_dimension_numbers<[1], [0], [0], [1], [0, 0, 1, 1], [], []>} : vector<16x8xf32>, vector<8x128xf32>, vector<16x128xf32> -> vector<16x128xf32>
    %250 = arith.addf %245, %249 : vector<16x128xf32>
    %251 = vector.extract_strided_slice %139 {offsets = [352, 0], sizes = [16, 8], strides = [1, 1]} : vector<400x8xf32> to vector<16x8xf32>
    %c22_177 = arith.constant 22 : index
    %c0_178 = arith.constant 0 : index
    %c0_179 = arith.constant 0 : index
    %252 = vector.load %arg3[%c22_177, %c0_178, %c0_179] : memref<25x8x128xf32, #tpu.memory_space<vmem>>, vector<1x8x128xf32>
    %253 = vector.shape_cast %252 : vector<1x8x128xf32> to vector<8x128xf32>
    %cst_180 = arith.constant dense<0.000000e+00> : vector<16x128xf32>
    %254 = tpu.matmul %251, %253, %cst_180 {dimension_numbers = #tpu.dot_dimension_numbers<[1], [0], [0], [1], [0, 0, 1, 1], [], []>} : vector<16x8xf32>, vector<8x128xf32>, vector<16x128xf32> -> vector<16x128xf32>
    %255 = arith.addf %250, %254 : vector<16x128xf32>
    %256 = vector.extract_strided_slice %139 {offsets = [368, 0], sizes = [16, 8], strides = [1, 1]} : vector<400x8xf32> to vector<16x8xf32>
    %c23_181 = arith.constant 23 : index
    %c0_182 = arith.constant 0 : index
    %c0_183 = arith.constant 0 : index
    %257 = vector.load %arg3[%c23_181, %c0_182, %c0_183] : memref<25x8x128xf32, #tpu.memory_space<vmem>>, vector<1x8x128xf32>
    %258 = vector.shape_cast %257 : vector<1x8x128xf32> to vector<8x128xf32>
    %cst_184 = arith.constant dense<0.000000e+00> : vector<16x128xf32>
    %259 = tpu.matmul %256, %258, %cst_184 {dimension_numbers = #tpu.dot_dimension_numbers<[1], [0], [0], [1], [0, 0, 1, 1], [], []>} : vector<16x8xf32>, vector<8x128xf32>, vector<16x128xf32> -> vector<16x128xf32>
    %260 = arith.addf %255, %259 : vector<16x128xf32>
    %261 = vector.extract_strided_slice %139 {offsets = [384, 0], sizes = [16, 8], strides = [1, 1]} : vector<400x8xf32> to vector<16x8xf32>
    %c24_185 = arith.constant 24 : index
    %c0_186 = arith.constant 0 : index
    %c0_187 = arith.constant 0 : index
    %262 = vector.load %arg3[%c24_185, %c0_186, %c0_187] : memref<25x8x128xf32, #tpu.memory_space<vmem>>, vector<1x8x128xf32>
    %263 = vector.shape_cast %262 : vector<1x8x128xf32> to vector<8x128xf32>
    %cst_188 = arith.constant dense<0.000000e+00> : vector<16x128xf32>
    %264 = tpu.matmul %261, %263, %cst_188 {dimension_numbers = #tpu.dot_dimension_numbers<[1], [0], [0], [1], [0, 0, 1, 1], [], []>} : vector<16x8xf32>, vector<8x128xf32>, vector<16x128xf32> -> vector<16x128xf32>
    %265 = arith.addf %260, %264 : vector<16x128xf32>
    %266 = vector.broadcast %5 : vector<1x128xf32> to vector<16x128xf32>
    %267 = arith.addf %265, %266 : vector<16x128xf32>
    %268 = math.tanh %267 : vector<16x128xf32>
    %c16_189 = arith.constant 16 : index
    %c0_190 = arith.constant 0 : index
    %269 = vector.load %arg5[%c16_189, %c0_190] : memref<32x128xf32, #tpu.memory_space<vmem>>, vector<16x128xf32>
    tpu.vector_store %arg5[%c16_189, %c0_190], %268 {strides = array<i32>} : memref<32x128xf32, #tpu.memory_space<vmem>>, vector<16x128xf32>,
    return
  }
}

</mosaic_0001>

<bundles_post_ra>
// kernel: encoder_forward.1
= control target key start
LH: loop header
LB: loop body
LE: loop exit
PB: predicated region body
PF: predicated region fallthrough
CT: control target
= control target key end

     0   :  { %s8009_s0 = inlined_call_operand.vmem [shape: f32[288,128], index: 0, kind: input, shape index: {}]   ;;  %s8010_s1 = inlined_call_operand.vmem [shape: f32[128,8], index: 1, kind: input, shape index: {}]   ;;  %s8011_s2 = inlined_call_operand.vmem [shape: f32[400,144], index: 2, kind: input, shape index: {}]   ;;  %s8012_s3 = inlined_call_operand.vmem [shape: f32[25,8,128], index: 3, kind: input, shape index: {}]   ;;  %s8013_s4 = inlined_call_operand.vmem [shape: f32[1,128], index: 4, kind: input, shape index: {}]   ;;  %s8014_s5 = inlined_call_operand.hbm [shape: f32[32,128], index: 5, kind: output, shape index: {}]  }
   0x1   :  { %v57_v0 = vld [vmem:[%s8010_s1] sm:$0xff]  ;;  %v58_v1 = vld [vmem:[%s8010_s1 + $0x8] sm:$0xff]  ;;  %v59_v2 = vld [vmem:[%s8010_s1 + $0x10] sm:$0xff] }
   0x2   :  { %v6274_v3 = vpack.c.bf16 %v58_v1, %v57_v0  ;;  %v60_v4 = vld [vmem:[%s8010_s1 + $0x18] sm:$0xff]  ;;  %v61_v6 = vld [vmem:[%s8010_s1 + $0x20] sm:$0xff]  ;;  %v62_v7 = vld [vmem:[%s8010_s1 + $0x28] sm:$0xff] }
   0x3   :  { %v6278_v5 = vpack.c.bf16 %v60_v4, %v59_v2  ;;  %v6282_v8 = vpack.c.bf16 %v62_v7, %v61_v6  ;;  %v21_v9 = vld [vmem:[%s8009_s0] sm:$0xff]  ;;  %v63_v10 = vld [vmem:[%s8010_s1 + $0x30] sm:$0xff]  ;;  %v64_v11 = vld [vmem:[%s8010_s1 + $0x38] sm:$0xff] }
   0x4   :  { %6275 = vmatprep.subr.bf16.mxu0 %v6274_v3  ;;  %6360 = vmatprep.subr.bf16.mxu1 %v6274_v3  ;;  %v31_v12 = vld [vmem:[%s8009_s0 + $0x50] sm:$0xff]  ;;  %v6286_v13 = vpack.c.bf16 %v64_v11, %v63_v10  ;;  %v65_v14 = vld [vmem:[%s8010_s1 + $0x40] sm:$0xff]  ;;  %v66_v15 = vld [vmem:[%s8010_s1 + $0x48] sm:$0xff] }
   0x5   :  { %6277 = vmatpush3.bf16.msra.mxu0 %v6274_v3  ;;  %6368 = vmatpush3.bf16.msra.mxu1 %v6274_v3 }
   0x6   :  { %6279 = vmatprep.subr.bf16.mxu0 %v6278_v5  ;;  %6361 = vmatprep.subr.bf16.mxu1 %v6278_v5 }
   0x7   :  { %5970 = vmatprep.mubr.f32.mxu0 %v21_v9  ;;  %5985 = vmatprep.mubr.f32.mxu1 %v31_v12 }
   0x9   :  { %6281 = vmatpush3.bf16.msra.mxu0 %v6278_v5  ;;  %6369 = vmatpush3.bf16.msra.mxu1 %v6278_v5 }
   0xa   :  { %6283 = vmatprep.subr.bf16.mxu0 %v6282_v8  ;;  %6362 = vmatprep.subr.bf16.mxu1 %v6282_v8 }
   0xb   :  { %10 = vsyncpa [#allocation3], 0  ;;  %v6290_v16 = vpack.c.bf16 %v66_v15, %v65_v14  ;;  %v67_v17 = vld [vmem:[%s8010_s1 + $0x50] sm:$0xff]  ;;  %v68_v18 = vld [vmem:[%s8010_s1 + $0x58] sm:$0xff]  ;;  %v8015_v44 = vmov 0.0|0.0   ;;  %vm455_vm0 = vcmask 130048  }
   0xc   :  { %v6294_v19 = vpack.c.bf16 %v68_v18, %v67_v17  ;;  %v69_v20 = vld [vmem:[%s8010_s1 + $0x60] sm:$0xff]  ;;  %v70_v21 = vld [vmem:[%s8010_s1 + $0x68] sm:$0xff]  ;;  %v71_v23 = vld [vmem:[%s8010_s1 + $0x70] sm:$0xff]  ;;  %vm924_vm1 = vcmask 64512  }
   0xd   :  { %6285 = vmatpush3.bf16.msra.mxu0 %v6282_v8  ;;  %6370 = vmatpush3.bf16.msra.mxu1 %v6282_v8  ;;  %v6298_v22 = vpack.c.bf16 %v70_v21, %v69_v20  ;;  %v72_v24 = vld [vmem:[%s8010_s1 + $0x78] sm:$0xff]  ;;  %v22_v26 = vld [vmem:[%s8009_s0 + $0x8] sm:$0xff]  ;;  %v23_v28 = vld [vmem:[%s8009_s0 + $0x10] sm:$0xff] }
   0xe   :  { %6287 = vmatprep.subr.bf16.mxu0 %v6286_v13  ;;  %6363 = vmatprep.subr.bf16.mxu1 %v6286_v13  ;;  %v6302_v25 = vpack.c.bf16 %v72_v24, %v71_v23  ;;  %v32_v27 = vld [vmem:[%s8009_s0 + $0x58] sm:$0xff]  ;;  %v33_v29 = vld [vmem:[%s8009_s0 + $0x60] sm:$0xff]  ;;  %v34_v31 = vld [vmem:[%s8009_s0 + $0x68] sm:$0xff] }
   0xf   :  { %v24_v30 = vld [vmem:[%s8009_s0 + $0x18] sm:$0xff]  ;;  %v25_v32 = vld [vmem:[%s8009_s0 + $0x20] sm:$0xff]  ;;  %v35_v33 = vld [vmem:[%s8009_s0 + $0x70] sm:$0xff] }
  0x10   :  { %v26_v34 = vld [vmem:[%s8009_s0 + $0x28] sm:$0xff]  ;;  %v36_v35 = vld [vmem:[%s8009_s0 + $0x78] sm:$0xff]  ;;  %v27_v36 = vld [vmem:[%s8009_s0 + $0x30] sm:$0xff] }
  0x11   :  { %6289 = vmatpush3.bf16.msra.mxu0 %v6286_v13  ;;  %6371 = vmatpush3.bf16.msra.mxu1 %v6286_v13  ;;  %v37_v37 = vld [vmem:[%s8009_s0 + $0x80] sm:$0xff]  ;;  %v28_v38 = vld [vmem:[%s8009_s0 + $0x38] sm:$0xff]  ;;  %v38_v39 = vld [vmem:[%s8009_s0 + $0x88] sm:$0xff] }
  0x12   :  { %6291 = vmatprep.subr.bf16.mxu0 %v6290_v16  ;;  %6364 = vmatprep.subr.bf16.mxu1 %v6290_v16  ;;  %v29_v40 = vld [vmem:[%s8009_s0 + $0x40] sm:$0xff]  ;;  %v30_v41 = vld [vmem:[%s8009_s0 + $0x48] sm:$0xff]  ;;  %v39_v42 = vld [vmem:[%s8009_s0 + $0x90] sm:$0xff] }
  0x13   :  { %v40_v43 = vld [vmem:[%s8009_s0 + $0x98] sm:$0xff]  ;;  %v41_v45 = vld [vmem:[%s8009_s0 + $0xa0] sm:$0xff]  ;;  %v42_v46 = vld [vmem:[%s8009_s0 + $0xa8] sm:$0xff] }
  0x14   :  { %v43_v47 = vld [vmem:[%s8009_s0 + $0xb0] sm:$0xff]  ;;  %v44_v48 = vld [vmem:[%s8009_s0 + $0xb8] sm:$0xff]  ;;  %v45_v49 = vld [vmem:[%s8009_s0 + $0xc0] sm:$0xff] }
  0x15   :  { %6293 = vmatpush3.bf16.msra.mxu0 %v6290_v16  ;;  %6372 = vmatpush3.bf16.msra.mxu1 %v6290_v16  ;;  %v46_v50 = vld [vmem:[%s8009_s0 + $0xc8] sm:$0xff]  ;;  %v47_v51 = vld [vmem:[%s8009_s0 + $0xd0] sm:$0xff]  ;;  %v48_v52 = vld [vmem:[%s8009_s0 + $0xd8] sm:$0xff] }
  0x16   :  { %6295 = vmatprep.subr.bf16.mxu0 %v6294_v19  ;;  %6365 = vmatprep.subr.bf16.mxu1 %v6294_v19  ;;  %v49_v53 = vld [vmem:[%s8009_s0 + $0xe0] sm:$0xff]  ;;  %v50_v54 = vld [vmem:[%s8009_s0 + $0xe8] sm:$0xff]  ;;  %v51_v55 = vld [vmem:[%s8009_s0 + $0xf0] sm:$0xff] }
  0x17   :  { %v52_v56 = vld [vmem:[%s8009_s0 + $0xf8] sm:$0xff]  ;;  %v53_v57 = vld [vmem:[%s8009_s0 + $0x100] sm:$0xff]  ;;  %v54_v58 = vld [vmem:[%s8009_s0 + $0x108] sm:$0xff] }
  0x18   :  { %v55_v59 = vld [vmem:[%s8009_s0 + $0x110] sm:$0xff]  ;;  %v56_v60 = vld [vmem:[%s8009_s0 + $0x118] sm:$0xff]  ;;  %v355_v61 = vld [vmem:[%s8011_s2 + $0x8] sm:$0xff] }
  0x19   :  { %6297 = vmatpush3.bf16.msra.mxu0 %v6294_v19  ;;  %6373 = vmatpush3.bf16.msra.mxu1 %v6294_v19 }
  0x1a   :  { %6299 = vmatprep.subr.bf16.mxu0 %v6298_v22  ;;  %6366 = vmatprep.subr.bf16.mxu1 %v6298_v22 }
  0x1d   :  { %6301 = vmatpush3.bf16.msra.mxu0 %v6298_v22  ;;  %6374 = vmatpush3.bf16.msra.mxu1 %v6298_v22 }
  0x1e   :  { %6303 = vmatprep.subr.bf16.mxu0 %v6302_v25  ;;  %6367 = vmatprep.subr.bf16.mxu1 %v6302_v25 }
  0x21   :  { %6305 = vmatpush3.bf16.msra.mxu0 %v6302_v25  ;;  %6375 = vmatpush3.bf16.msra.mxu1 %v6302_v25 }
  0x22   :  { %6306 = vmatprep.subr.bf16.mxu1 %v8015_v44 }
  0x24   :  { %5971 = vmatmul.mubr.f32.vlgmr.msra.gmra.mrb[0].mxu0 %v22_v26  ;;  %5986 = vmatmul.mubr.f32.vlgmr.msra.gmra.mrb[0].mxu1 %v32_v27 }
  0x25   :  { %5973 = vmatprep.mubr.f32.mxu0 %v23_v28  ;;  %5988 = vmatprep.mubr.f32.mxu1 %v33_v29 }
  0x28   :  { %5974 = vmatmul.mubr.f32.gmra.mrb[2].mxu0 %v24_v30  ;;  %5989 = vmatmul.mubr.f32.gmra.mrb[2].mxu1 %v34_v31 }
  0x29   :  { %5976 = vmatprep.mubr.f32.mxu0 %v25_v32  ;;  %5991 = vmatprep.mubr.f32.mxu1 %v35_v33 }
  0x2c   :  { %5977 = vmatmul.mubr.f32.gmra.mrb[4].mxu0 %v26_v34  ;;  %5992 = vmatmul.mubr.f32.gmra.mrb[4].mxu1 %v36_v35 }
  0x2d   :  { %5979 = vmatprep.mubr.f32.mxu0 %v27_v36  ;;  %5994 = vmatprep.mubr.f32.mxu1 %v37_v37 }
  0x30   :  { %5980 = vmatmul.mubr.f32.gmra.mrb[6].mxu0 %v28_v38  ;;  %5995 = vmatmul.mubr.f32.gmra.mrb[6].mxu1 %v38_v39 }
  0x31   :  { %5982 = vmatprep.mubr.f32.mxu0 %v29_v40  ;;  %5997 = vmatprep.mubr.f32.mxu1 %v39_v42 }
  0x34   :  { %5983 = vmatmul.mubr.f32.gmra.mrb[8].mxu0 %v30_v41  ;;  %5998 = vmatmul.mubr.f32.gmra.mrb[8].mxu1 %v40_v43  ;;  %v6787_v43 = vld [vmem:[%s8011_s2] sm:$0xff] }
  0x35   :  { %6000 = vmatprep.mubr.f32.mxu1 %v41_v45  ;;  %v6792_v45 = vld [vmem:[%s8011_s2 + $0x18] sm:$0xff] }
  0x38   :  { %6001 = vmatmul.mubr.f32.gmra.mrb[10].mxu1 %v42_v46  ;;  %v6800_v46 = vld [vmem:[%s8011_s2 + $0x10] sm:$0xff] }
  0x39   :  { %6003 = vmatprep.mubr.f32.mxu1 %v43_v47  ;;  %v6805_v47 = vld [vmem:[%s8011_s2 + $0x28] sm:$0xff] }
  0x3c   :  { %6004 = vmatmul.mubr.f32.gmra.mrb[12].mxu1 %v44_v48  ;;  %v6813_v48 = vld [vmem:[%s8011_s2 + $0x20] sm:$0xff] }
  0x3d   :  { %6006 = vmatprep.mubr.f32.mxu1 %v45_v49  ;;  %v6818_v49 = vld [vmem:[%s8011_s2 + $0x38] sm:$0xff] }
  0x40   :  { %6007 = vmatmul.mubr.f32.gmra.mrb[14].mxu1 %v46_v50  ;;  %v6826_v50 = vld [vmem:[%s8011_s2 + $0x30] sm:$0xff] }
  0x41   :  { %6009 = vmatprep.mubr.f32.mxu1 %v47_v51  ;;  %v6831_v51 = vld [vmem:[%s8011_s2 + $0x48] sm:$0xff] }
  0x44   :  { %6010 = vmatmul.mubr.f32.gmra.mrb[16].mxu1 %v48_v52  ;;  %v6839_v52 = vld [vmem:[%s8011_s2 + $0x40] sm:$0xff] }
  0x45   :  { %6012 = vmatprep.mubr.f32.mxu1 %v49_v53  ;;  %v6844_v53 = vld [vmem:[%s8011_s2 + $0x58] sm:$0xff] }
  0x48   :  { %6013 = vmatmul.mubr.f32.gmra.mrb[18].mxu1 %v50_v54  ;;  %v6852_v54 = vld [vmem:[%s8011_s2 + $0x50] sm:$0xff] }
  0x49   :  { %6015 = vmatprep.mubr.f32.mxu1 %v51_v55  ;;  %v6857_v55 = vld [vmem:[%s8011_s2 + $0x68] sm:$0xff] }
  0x4c   :  { %6016 = vmatmul.mubr.f32.gmra.mrb[20].mxu1 %v52_v56  ;;  %v6865_v56 = vld [vmem:[%s8011_s2 + $0x60] sm:$0xff] }
  0x4d   :  { %6018 = vmatprep.mubr.f32.mxu1 %v53_v57  ;;  %v6870_v57 = vld [vmem:[%s8011_s2 + $0x78] sm:$0xff] }
  0x50   :  { %6019 = vmatmul.mubr.f32.gmra.mrb[22].mxu1 %v54_v58  ;;  %v6878_v58 = vld [vmem:[%s8011_s2 + $0x70] sm:$0xff] }
  0x51   :  { %6021 = vmatprep.mubr.f32.mxu1 %v55_v59  ;;  %v6883_v59 = vld [vmem:[%s8011_s2 + $0x88] sm:$0xff] }
  0x54   :  { %6022 = vmatmul.mubr.f32.gmra.mrb[24].mxu1 %v56_v60  ;;  %v6891_v60 = vld [vmem:[%s8011_s2 + $0x80] sm:$0xff] }
  0x55   :  { %5487 = vmatprep.mubr.msk.f32.mxu1 %vm455_vm0, %v355_v61  ;;  %v6896_v61 = vld [vmem:[%s8011_s2 + $0x98] sm:$0xff] }
  0xf7   :  { %v5972_v62 = vpop.f32.mrb[0].mxu0  ;;  %v5987_v63 = vpop.f32.mrb[0].mxu1 }
  0xf8   :  { %6476 = vtanh.f32 %v5972_v62  ;;  %v139_v0 = vpop.f32.mrb[1].mxu0  ;;  %v189_v1 = vpop.f32.mrb[1].mxu1  ;;  %v6904_v62 = vld [vmem:[%s8011_s2 + $0x90] sm:$0xff] }
  0xf9   :  { %6478 = vtanh.f32 %v139_v0  ;;  %v6917_v0 = vld [vmem:[%s8011_s2 + $0xa0] sm:$0xff] }
  0xfa   :  { %6480 = vtanh.f32 %v5987_v63  ;;  %v6909_v63 = vld [vmem:[%s8011_s2 + $0xa8] sm:$0xff] }
  0xfb   :  { %v5975_v2 = vpop.f32.mrb[2].mxu0  ;;  %6482 = vtanh.f32 %v189_v1  ;;  %v5990_v3 = vpop.f32.mrb[2].mxu1  ;;  %v6922_v1 = vld [vmem:[%s8011_s2 + $0xb8] sm:$0xff] }
  0xfc   :  { %6484 = vtanh.f32 %v5975_v2  ;;  %v149_v4 = vpop.f32.mrb[3].mxu0  ;;  %v199_v5 = vpop.f32.mrb[3].mxu1  ;;  %v6930_v2 = vld [vmem:[%s8011_s2 + $0xb0] sm:$0xff] }
  0xfd   :  { %6486 = vtanh.f32 %v149_v4  ;;  %v6943_v4 = vld [vmem:[%s8011_s2 + $0xc0] sm:$0xff] }
  0xfe   :  { %6488 = vtanh.f32 %v5990_v3  ;;  %v6935_v3 = vld [vmem:[%s8011_s2 + $0xc8] sm:$0xff] }
  0xff   :  { %v5978_v6 = vpop.f32.mrb[4].mxu0  ;;  %6490 = vtanh.f32 %v199_v5  ;;  %v5993_v7 = vpop.f32.mrb[4].mxu1  ;;  %v6948_v5 = vld [vmem:[%s8011_s2 + $0xd8] sm:$0xff] }
 0x100   :  { %6492 = vtanh.f32 %v5978_v6  ;;  %v159_v8 = vpop.f32.mrb[5].mxu0  ;;  %v209_v9 = vpop.f32.mrb[5].mxu1 }
 0x101   :  { %6494 = vtanh.f32 %v159_v8  ;;  %v6956_v8 = vld [vmem:[%s8011_s2 + $0xd0] sm:$0xff] }
 0x102   :  { %v6477_v10 = vpop.eup %6476  ;;  %6496 = vtanh.f32 %v5993_v7 }
 0x103   :  { %v6479_v11 = vpop.eup %6478  ;;  %v5981_v12 = vpop.f32.mrb[6].mxu0  ;;  %6498 = vtanh.f32 %v209_v9  ;;  %v6961_v9 = vld [vmem:[%s8011_s2 + $0xe8] sm:$0xff] }
 0x104   :  { %v5996_v13 = vpop.f32.mrb[6].mxu1  ;;  %v6481_v14 = vpop.eup %6480  ;;  %6500 = vtanh.f32 %v5981_v12  ;;  %v6307_v16 = vpack.c.bf16 %v6477_v10, %v6479_v11  ;;  %v6969_v12 = vld [vmem:[%s8011_s2 + $0xe0] sm:$0xff] }
 0x105   :  { %v169_v15 = vpop.f32.mrb[7].mxu0  ;;  %v219_v17 = vpop.f32.mrb[7].mxu1 }
 0x106   :  { %v6483_v18 = vpop.eup %6482  ;;  %6502 = vtanh.f32 %v169_v15  ;;  %6308 = vmatpush1.bf16.msra.mxu1 %v6307_v16  ;;  %v6982_v16 = vld [vmem:[%s8011_s2 + $0xf0] sm:$0xff] }
 0x107   :  { %v6485_v19 = vpop.eup %6484  ;;  %6504 = vtanh.f32 %v5996_v13  ;;  %v6322_v20 = vpack.c.bf16 %v6481_v14, %v6483_v18  ;;  %v5984_v22 = vpop.f32.mrb[8].mxu0  ;;  %6309 = vmatprep.subr.bf16.mxu1 %v8015_v44  ;;  %v6974_v13 = vld [vmem:[%s8011_s2 + $0xf8] sm:$0xff]  ;;  %v6989_v18 = vld [vmem:[%s8011_s2 + $0x108] sm:$0xff] }
 0x108   :  { %v6487_v21 = vpop.eup %6486  ;;  %6506 = vtanh.f32 %v219_v17  ;;  %v179_v24 = vpop.f32.mrb[9].mxu0 }
 0x109   :  { %v6489_v23 = vpop.eup %6488  ;;  %6508 = vtanh.f32 %v5984_v22  ;;  %v6310_v25 = vpack.c.bf16 %v6485_v19, %v6487_v21  ;;  %v5999_v6 = vpop.f32.mrb[8].mxu1  ;;  %v7124_v22 = vld [vmem:[%s8011_s2 + $0x178] sm:$0xff] }
 0x10a   :  { %v6491_v26 = vpop.eup %6490  ;;  %6510 = vtanh.f32 %v179_v24  ;;  %v229_v7 = vpop.f32.mrb[9].mxu1  ;;  %8134 = vst [vmem:[#allocation15_spill] sm:$0xff] %v7124_v22 }
 0x10b   :  { %v6493_v27 = vpop.eup %6492  ;;  %6311 = vmatpush1.bf16.msra.mxu1 %v6310_v25  ;;  %v6325_v28 = vpack.c.bf16 %v6489_v23, %v6491_v26  ;;  %6512 = vtanh.f32 %v5999_v6  ;;  %v6002_v10 = vpop.f32.mrb[10].mxu1  ;;  %v7001_v23 = vld [vmem:[%s8011_s2 + $0x100] sm:$0xff]  ;;  %v7008_v25 = vld [vmem:[%s8011_s2 + $0x118] sm:$0xff] }
 0x10c   :  { %v6495_v29 = vpop.eup %6494  ;;  %6312 = vmatprep.subr.bf16.mxu1 %v8015_v44  ;;  %6514 = vtanh.f32 %v229_v7  ;;  %v239_v11 = vpop.f32.mrb[11].mxu1  ;;  %v7058_v7 = vld [vmem:[%s8011_s2 + $0x130] sm:$0xff] }
 0x10d   :  { %v6497_v30 = vpop.eup %6496  ;;  %v6313_v31 = vpack.c.bf16 %v6493_v27, %v6495_v29  ;;  %6516 = vtanh.f32 %v6002_v10  ;;  %8127 = vst [vmem:[#allocation8_spill] sm:$0xff] %v7058_v7 }
 0x10e   :  { %v6499_v32 = vpop.eup %6498  ;;  %6518 = vtanh.f32 %v239_v11  ;;  %v7065_v11 = vld [vmem:[%s8011_s2 + $0x148] sm:$0xff] }
 0x10f   :  { %v6501_v33 = vpop.eup %6500  ;;  %6314 = vmatpush1.bf16.msra.mxu1 %v6313_v31  ;;  %v6328_v34 = vpack.c.bf16 %v6497_v30, %v6499_v32  ;;  %v6005_v14 = vpop.f32.mrb[12].mxu1  ;;  %v7020_v30 = vld [vmem:[%s8011_s2 + $0x110] sm:$0xff]  ;;  %v7027_v32 = vld [vmem:[%s8011_s2 + $0x128] sm:$0xff]  ;;  %8128 = vst [vmem:[#allocation9_spill] sm:$0xff] %v7065_v11 }
 0x110   :  { %v6503_v35 = vpop.eup %6502  ;;  %6315 = vmatprep.subr.bf16.mxu1 %v8015_v44  ;;  %v249_v15 = vpop.f32.mrb[13].mxu1  ;;  %6520 = vtanh.f32 %v6005_v14  ;;  %8124 = vst [vmem:[#allocation5_spill] sm:$0xff] %v7027_v32 }
 0x111   :  { %v6505_v36 = vpop.eup %6504  ;;  %v6316_v37 = vpack.c.bf16 %v6501_v33, %v6503_v35  ;;  %6522 = vtanh.f32 %v249_v15 }
 0x112   :  { %v6507_v38 = vpop.eup %6506 }
 0x113   :  { %v6509_v39 = vpop.eup %6508  ;;  %6317 = vmatpush1.bf16.msra.mxu1 %v6316_v37  ;;  %v6331_v40 = vpack.c.bf16 %v6505_v36, %v6507_v38  ;;  %v6008_v19 = vpop.f32.mrb[14].mxu1  ;;  %v7039_v37 = vld [vmem:[%s8011_s2 + $0x120] sm:$0xff] }
 0x114   :  { %v6511_v41 = vpop.eup %6510  ;;  %6318 = vmatprep.subr.bf16.mxu1 %v8015_v44  ;;  %v259_v21 = vpop.f32.mrb[15].mxu1  ;;  %6524 = vtanh.f32 %v6008_v19  ;;  %8125 = vst [vmem:[#allocation6_spill] sm:$0xff] %v7039_v37  ;;  %v7117_v36 = vld [vmem:[%s8011_s2 + $0x160] sm:$0xff] }
 0x115   :  { %v6319_v42 = vpack.c.bf16 %v6509_v39, %v6511_v41  ;;  %v6984_v17 = vpop.eup %6512  ;;  %6526 = vtanh.f32 %v259_v21  ;;  %v7046_v39 = vld [vmem:[%s8011_s2 + $0x138] sm:$0xff]  ;;  %v7098_v21 = vld [vmem:[%s8011_s2 + $0x150] sm:$0xff]  ;;  %8133 = vst [vmem:[#allocation14_spill] sm:$0xff] %v7117_v36 }
 0x116   :  { %8126 = vst [vmem:[#allocation7_spill] sm:$0xff] %v7046_v39  ;;  %8131 = vst [vmem:[#allocation12_spill] sm:$0xff] %v7098_v21 }
 0x117   :  { %6320 = vmatpush1.bf16.msra.mxu1 %v6319_v42  ;;  %v6011_v26 = vpop.f32.mrb[16].mxu1 }
 0x118   :  { %6321 = vmatprep.subr.bf16.mxu1 %v8015_v44  ;;  %6528 = vtanh.f32 %v6011_v26  ;;  %v7077_v26 = vld [vmem:[%s8011_s2 + $0x140] sm:$0xff] }
 0x119   :  { %8129 = vst [vmem:[#allocation10_spill] sm:$0xff] %v7077_v26 }
 0x11b   :  { %6323 = vmatpush1.bf16.msra.mxu1 %v6322_v20  ;;  %v6991_v20 = vpop.eup %6514 }
 0x11c   :  { %6324 = vmatprep.subr.bf16.mxu1 %v8015_v44  ;;  %v7003_v24 = vpop.eup %6516 }
 0x11d   :  { %v7010_v27 = vpop.eup %6518 }
 0x11e   :  { %v7022_v31 = vpop.eup %6520 }
 0x11f   :  { %6326 = vmatpush1.bf16.msra.mxu1 %v6325_v28  ;;  %v269_v28 = vpop.f32.mrb[17].mxu1 }
 0x120   :  { %6327 = vmatprep.subr.bf16.mxu1 %v8015_v44  ;;  %6530 = vtanh.f32 %v269_v28  ;;  %v6014_v33 = vpop.f32.mrb[18].mxu1 }
 0x121   :  { %v279_v35 = vpop.f32.mrb[19].mxu1  ;;  %6532 = vtanh.f32 %v6014_v33  ;;  %v7084_v33 = vld [vmem:[%s8011_s2 + $0x158] sm:$0xff] }
 0x122   :  { %6534 = vtanh.f32 %v279_v35  ;;  %8130 = vst [vmem:[#allocation11_spill] sm:$0xff] %v7084_v33 }
 0x123   :  { %6329 = vmatpush1.bf16.msra.mxu1 %v6328_v34  ;;  %v7029_v34 = vpop.eup %6522 }
 0x124   :  { %6330 = vmatprep.subr.bf16.mxu1 %v8015_v44  ;;  %v7041_v38 = vpop.eup %6524  ;;  %v7174_v44 = vld [vmem:[%s8012_s3] sm:$0xff] }
 0x125   :  { %v7048_v41 = vpop.eup %6526  ;;  %8140 = vst [vmem:[#allocation21_spill] sm:$0xff] %v7174_v44 }
 0x126   :  { %v7060_v10 = vpop.eup %6528 }
 0x127   :  { %6332 = vmatpush1.bf16.msra.mxu1 %v6331_v40  ;;  %v6017_v40 = vpop.f32.mrb[20].mxu1 }
 0x128   :  { %6536 = vtanh.f32 %v6017_v40  ;;  %v289_v42 = vpop.f32.mrb[21].mxu1 }
 0x129   :  { %6538 = vtanh.f32 %v289_v42  ;;  %v6020_v14 = vpop.f32.mrb[22].mxu1 }
 0x12a   :  { %671 = vmatmul.mubr.f32.vlgmr.msra.gmra.mrb[26].mxu1 %v6787_v43  ;;  %v7067_v15 = vpop.eup %6530  ;;  %6540 = vtanh.f32 %v6020_v14  ;;  %v299_v19 = vpop.f32.mrb[23].mxu1 }
 0x12b   :  { %5488 = vmatprep.mubr.msk.f32.mxu1 %vm455_vm0, %v6792_v45  ;;  %6542 = vtanh.f32 %v299_v19  ;;  %v7079_v28 = vpop.eup %6532  ;;  %v6023_v35 = vpop.f32.mrb[24].mxu1 }
 0x12c   :  { %v7086_v40 = vpop.eup %6534  ;;  %6544 = vtanh.f32 %v6023_v35  ;;  %v309_v42 = vpop.f32.mrb[25].mxu1  ;;  %v7105_v35 = vld [vmem:[%s8011_s2 + $0x168] sm:$0xff] }
 0x12d   :  { %6546 = vtanh.f32 %v309_v42  ;;  %8132 = vst [vmem:[#allocation13_spill] sm:$0xff] %v7105_v35  ;;  %v5537_v42 = vld [vmem:[%s8012_s3 + $0x8] sm:$0xff] }
 0x12e   :  { %676 = vmatmul.mubr.f32.gmra.mrb[28].mxu1 %v6800_v46  ;;  %6024 = vmatprep.subr.mxu0 %v5537_v42 }
 0x12f   :  { %5489 = vmatprep.mubr.msk.f32.mxu1 %vm455_vm0, %v6805_v47  ;;  %6025 = vmatpush3.msra.mxu0 %v5537_v42 }
 0x130   :  { %6149 = vmatprep.subr.mxu1 %v5537_v42  ;;  %6029 = vmatprep.subr.mxu0 %v7174_v44 }
 0x131   :  { %6150 = vmatpush3.msra.mxu1 %v5537_v42  ;;  %v7169_v42 = vld [vmem:[%s8011_s2 + $0x190] sm:$0xff] }
 0x132   :  { %681 = vmatmul.mubr.f32.gmra.mrb[30].mxu1 %v6813_v48  ;;  %v7091_v19 = vpop.eup %6536  ;;  %8139 = vst [vmem:[#allocation20_spill] sm:$0xff] %v7169_v42  ;;  %6154 = vmatprep.subr.mxu1 %v7174_v44 }
 0x133   :  { %5490 = vmatprep.mubr.msk.f32.mxu1 %vm455_vm0, %v6818_v49  ;;  %v7100_v6 = vpop.eup %6538 }
 0x134   :  { %v7110_v14 = vpop.eup %6540 }
 0x135   :  { %v7119_v29 = vpop.eup %6542 }
 0x136   :  { %686 = vmatmul.mubr.f32.gmra.mrb[32].mxu1 %v6826_v50 }
 0x137   :  { %5491 = vmatprep.mubr.msk.f32.mxu1 %vm455_vm0, %v6831_v51 }
 0x13a   :  { %691 = vmatmul.mubr.f32.gmra.mrb[34].mxu1 %v6839_v52 }
 0x13b   :  { %5492 = vmatprep.mubr.msk.f32.mxu1 %vm455_vm0, %v6844_v53 }
 0x13e   :  { %696 = vmatmul.mubr.f32.gmra.mrb[36].mxu1 %v6852_v54 }
 0x13f   :  { %5493 = vmatprep.mubr.msk.f32.mxu1 %vm455_vm0, %v6857_v55 }
 0x142   :  { %701 = vmatmul.mubr.f32.gmra.mrb[38].mxu1 %v6865_v56 }
 0x143   :  { %5494 = vmatprep.mubr.msk.f32.mxu1 %vm455_vm0, %v6870_v57 }
 0x146   :  { %706 = vmatmul.mubr.f32.gmra.mrb[40].mxu1 %v6878_v58 }
 0x147   :  { %5495 = vmatprep.mubr.msk.f32.mxu1 %vm455_vm0, %v6883_v59 }
 0x14a   :  { %711 = vmatmul.mubr.f32.gmra.mrb[42].mxu1 %v6891_v60 }
 0x14b   :  { %5496 = vmatprep.mubr.msk.f32.mxu1 %vm455_vm0, %v6896_v61 }
 0x14e   :  { %716 = vmatmul.mubr.f32.gmra.mrb[44].mxu1 %v6904_v62 }
 0x14f   :  { %5497 = vmatprep.mubr.msk.f32.mxu1 %vm455_vm0, %v6909_v63 }
 0x152   :  { %721 = vmatmul.mubr.f32.gmra.mrb[46].mxu1 %v6917_v0 }
 0x153   :  { %5498 = vmatprep.mubr.msk.f32.mxu1 %vm455_vm0, %v6922_v1 }
 0x156   :  { %726 = vmatmul.mubr.f32.gmra.mrb[48].mxu1 %v6930_v2 }
 0x157   :  { %5499 = vmatprep.mubr.msk.f32.mxu1 %vm455_vm0, %v6935_v3 }
 0x15a   :  { %731 = vmatmul.mubr.f32.gmra.mrb[50].mxu1 %v6943_v4 }
 0x15b   :  { %5500 = vmatprep.mubr.msk.f32.mxu1 %vm455_vm0, %v6948_v5 }
 0x15e   :  { %736 = vmatmul.mubr.f32.gmra.mrb[52].mxu1 %v6956_v8 }
 0x15f   :  { %5501 = vmatprep.mubr.msk.f32.mxu1 %vm455_vm0, %v6961_v9 }
 0x162   :  { %741 = vmatmul.mubr.f32.gmra.mrb[54].mxu1 %v6969_v12 }
 0x163   :  { %5502 = vmatprep.mubr.msk.f32.mxu1 %vm455_vm0, %v6974_v13 }
 0x166   :  { %746 = vmatmul.mubr.f32.gmra.mrb[56].mxu1 %v6982_v16 }
 0x167   :  { %5503 = vmatprep.mubr.msk.f32.mxu1 %vm455_vm0, %v6989_v18 }
 0x16a   :  { %751 = vmatmul.mubr.f32.gmra.mrb[58].mxu1 %v7001_v23 }
 0x16b   :  { %5504 = vmatprep.mubr.msk.f32.mxu1 %vm455_vm0, %v7008_v25 }
 0x16e   :  { %756 = vmatmul.mubr.f32.gmra.mrb[60].mxu1 %v7020_v30 }
 0x16f   :  { %5505 = vmatprep.mubr.msk.f32.mxu1 %vm455_vm0, %v7027_v32 }
 0x172   :  { %761 = vmatmul.mubr.f32.gmra.mrb[62].mxu1 %v7039_v37 }
 0x173   :  { %5506 = vmatprep.mubr.msk.f32.mxu1 %vm455_vm0, %v7046_v39 }
 0x176   :  { %766 = vmatmul.mubr.f32.gmra.mrb[64].mxu1 %v7058_v7 }
 0x177   :  { %5507 = vmatprep.mubr.msk.f32.mxu1 %vm455_vm0, %v7065_v11 }
 0x17a   :  { %771 = vmatmul.mubr.f32.gmra.mrb[66].mxu1 %v7077_v26  ;;  %v7161_v26 = vld [vmem:[%s8011_s2 + $0x198] sm:$0xff] }
 0x17b   :  { %5508 = vmatprep.mubr.msk.f32.mxu1 %vm455_vm0, %v7084_v33  ;;  %8138 = vst [vmem:[#allocation19_spill] sm:$0xff] %v7161_v26 }
 0x17e   :  { %776 = vmatmul.mubr.f32.gmra.mrb[68].mxu1 %v7098_v21  ;;  %v7139_v21 = vld [vmem:[%s8011_s2 + $0x170] sm:$0xff] }
 0x17f   :  { %5509 = vmatprep.mubr.msk.f32.mxu1 %vm455_vm0, %v7105_v35  ;;  %v7132_v35 = vpop.eup %6544  ;;  %8135 = vst [vmem:[#allocation16_spill] sm:$0xff] %v7139_v21 }
 0x180   :  { %v7141_v33 = vpop.eup %6546 }
 0x182   :  { %781 = vmatmul.mubr.f32.gmra.mrb[70].mxu1 %v7117_v36  ;;  %v7146_v36 = vld [vmem:[%s8011_s2 + $0x188] sm:$0xff] }
 0x183   :  { %5510 = vmatprep.mubr.msk.f32.mxu1 %vm455_vm0, %v7124_v22  ;;  %8136 = vst [vmem:[#allocation17_spill] sm:$0xff] %v7146_v36  ;;  %v7156_v22 = vld [vmem:[%s8011_s2 + $0x180] sm:$0xff] }
 0x184   :  { %8137 = vst [vmem:[#allocation18_spill] sm:$0xff] %v7156_v22 }
 0x186   :  { %786 = vmatmul.mubr.f32.gmra.mrb[72].mxu1 %v7139_v21 }
 0x187   :  { %5511 = vmatprep.mubr.msk.f32.mxu1 %vm455_vm0, %v7146_v36  ;;  %v7179_v36 = vld [vmem:[%s8011_s2 + $0x1a8] sm:$0xff] }
 0x188   :  { %8141 = vst [vmem:[#allocation22_spill] sm:$0xff] %v7179_v36 }
 0x18a   :  { %791 = vmatmul.mubr.f32.gmra.mrb[74].mxu1 %v7156_v22  ;;  %v7194_v22 = vld [vmem:[%s8011_s2 + $0x1b8] sm:$0xff] }
 0x18b   :  { %5512 = vmatprep.mubr.msk.f32.mxu1 %vm455_vm0, %v7161_v26  ;;  %v7189_v26 = vld [vmem:[%s8011_s2 + $0x1a0] sm:$0xff]  ;;  %8143 = vst [vmem:[#allocation24_spill] sm:$0xff] %v7194_v22 }
 0x18c   :  { %8142 = vst [vmem:[#allocation23_spill] sm:$0xff] %v7189_v26 }
 0x18e   :  { %796 = vmatmul.mubr.f32.gmra.mrb[76].mxu1 %v7169_v42  ;;  %v7202_v42 = vld [vmem:[%s8011_s2 + $0x1b0] sm:$0xff] }
 0x18f   :  { %5513 = vmatprep.mubr.msk.f32.mxu1 %vm455_vm0, %v7179_v36  ;;  %8144 = vst [vmem:[#allocation25_spill] sm:$0xff] %v7202_v42  ;;  %v7207_v36 = vld [vmem:[%s8011_s2 + $0x1c8] sm:$0xff] }
 0x190   :  { %8145 = vst [vmem:[#allocation26_spill] sm:$0xff] %v7207_v36 }
 0x192   :  { %801 = vmatmul.mubr.f32.gmra.mrb[78].mxu1 %v7189_v26  ;;  %v7215_v26 = vld [vmem:[%s8011_s2 + $0x1c0] sm:$0xff] }
 0x193   :  { %5514 = vmatprep.mubr.msk.f32.mxu1 %vm455_vm0, %v7194_v22  ;;  %8146 = vst [vmem:[#allocation27_spill] sm:$0xff] %v7215_v26  ;;  %v7220_v22 = vld [vmem:[%s8011_s2 + $0x1d8] sm:$0xff] }
 0x194   :  { %8147 = vst [vmem:[#allocation28_spill] sm:$0xff] %v7220_v22 }
 0x196   :  { %806 = vmatmul.mubr.f32.gmra.mrb[80].mxu1 %v7202_v42  ;;  %v7228_v42 = vld [vmem:[%s8011_s2 + $0x1d0] sm:$0xff] }
 0x197   :  { %5515 = vmatprep.mubr.msk.f32.mxu1 %vm455_vm0, %v7207_v36  ;;  %8148 = vst [vmem:[#allocation29_spill] sm:$0xff] %v7228_v42  ;;  %v7233_v36 = vld [vmem:[%s8011_s2 + $0x1e8] sm:$0xff] }
 0x198   :  { %8149 = vst [vmem:[#allocation30_spill] sm:$0xff] %v7233_v36 }
 0x19a   :  { %811 = vmatmul.mubr.f32.gmra.mrb[82].mxu1 %v7215_v26  ;;  %v7241_v26 = vld [vmem:[%s8011_s2 + $0x1e0] sm:$0xff] }
 0x19b   :  { %5516 = vmatprep.mubr.msk.f32.mxu1 %vm455_vm0, %v7220_v22  ;;  %8150 = vst [vmem:[#allocation31_spill] sm:$0xff] %v7241_v26  ;;  %v7246_v22 = vld [vmem:[%s8011_s2 + $0x1f8] sm:$0xff] }
 0x19c   :  { %8151 = vst [vmem:[#allocation32_spill] sm:$0xff] %v7246_v22 }
 0x19e   :  { %816 = vmatmul.mubr.f32.gmra.mrb[84].mxu1 %v7228_v42  ;;  %v7254_v42 = vld [vmem:[%s8011_s2 + $0x1f0] sm:$0xff] }
 0x19f   :  { %5517 = vmatprep.mubr.msk.f32.mxu1 %vm455_vm0, %v7233_v36  ;;  %8152 = vst [vmem:[#allocation33_spill] sm:$0xff] %v7254_v42  ;;  %v7259_v36 = vld [vmem:[%s8011_s2 + $0x208] sm:$0xff] }
 0x1a0   :  { %8153 = vst [vmem:[#allocation34_spill] sm:$0xff] %v7259_v36 }
 0x1a2   :  { %821 = vmatmul.mubr.f32.gmra.mrb[86].mxu1 %v7241_v26  ;;  %v7267_v26 = vld [vmem:[%s8011_s2 + $0x200] sm:$0xff] }
 0x1a3   :  { %5518 = vmatprep.mubr.msk.f32.mxu1 %vm455_vm0, %v7246_v22  ;;  %8154 = vst [vmem:[#allocation35_spill] sm:$0xff] %v7267_v26  ;;  %v7272_v22 = vld [vmem:[%s8011_s2 + $0x218] sm:$0xff] }
 0x1a4   :  { %8155 = vst [vmem:[#allocation36_spill] sm:$0xff] %v7272_v22 }
 0x1a6   :  { %826 = vmatmul.mubr.f32.gmra.mrb[88].mxu1 %v7254_v42  ;;  %v7280_v42 = vld [vmem:[%s8011_s2 + $0x210] sm:$0xff] }
 0x1a7   :  { %5519 = vmatprep.mubr.msk.f32.mxu1 %vm455_vm0, %v7259_v36  ;;  %8156 = vst [vmem:[#allocation37_spill] sm:$0xff] %v7280_v42  ;;  %v7285_v36 = vld [vmem:[%s8011_s2 + $0x228] sm:$0xff] }
 0x1a8   :  { %8157 = vst [vmem:[#allocation38_spill] sm:$0xff] %v7285_v36 }
 0x1aa   :  { %831 = vmatmul.mubr.f32.gmra.mrb[90].mxu1 %v7267_v26  ;;  %v7293_v26 = vld [vmem:[%s8011_s2 + $0x220] sm:$0xff] }
 0x1ab   :  { %5520 = vmatprep.mubr.msk.f32.mxu1 %vm455_vm0, %v7272_v22  ;;  %8158 = vst [vmem:[#allocation39_spill] sm:$0xff] %v7293_v26  ;;  %v7298_v22 = vld [vmem:[%s8011_s2 + $0x238] sm:$0xff] }
 0x1ac   :  { %8159 = vst [vmem:[#allocation40_spill] sm:$0xff] %v7298_v22 }
 0x1ae   :  { %836 = vmatmul.mubr.f32.gmra.mrb[92].mxu1 %v7280_v42  ;;  %v7306_v42 = vld [vmem:[%s8011_s2 + $0x230] sm:$0xff] }
 0x1af   :  { %5521 = vmatprep.mubr.msk.f32.mxu1 %vm455_vm0, %v7285_v36  ;;  %8160 = vst [vmem:[#allocation41_spill] sm:$0xff] %v7306_v42  ;;  %v7311_v36 = vld [vmem:[%s8011_s2 + $0x248] sm:$0xff] }
 0x1b0   :  { %8161 = vst [vmem:[#allocation42_spill] sm:$0xff] %v7311_v36 }
 0x1b2   :  { %841 = vmatmul.mubr.f32.gmra.mrb[94].mxu1 %v7293_v26  ;;  %v7319_v26 = vld [vmem:[%s8011_s2 + $0x240] sm:$0xff] }
 0x1b3   :  { %5522 = vmatprep.mubr.msk.f32.mxu1 %vm455_vm0, %v7298_v22  ;;  %8162 = vst [vmem:[#allocation43_spill] sm:$0xff] %v7319_v26  ;;  %v7324_v22 = vld [vmem:[%s8011_s2 + $0x258] sm:$0xff] }
 0x1b4   :  { %8163 = vst [vmem:[#allocation44_spill] sm:$0xff] %v7324_v22 }
 0x1b6   :  { %846 = vmatmul.mubr.f32.gmra.mrb[96].mxu1 %v7306_v42  ;;  %v7332_v42 = vld [vmem:[%s8011_s2 + $0x250] sm:$0xff] }
 0x1b7   :  { %5523 = vmatprep.mubr.msk.f32.mxu1 %vm455_vm0, %v7311_v36  ;;  %8164 = vst [vmem:[#allocation45_spill] sm:$0xff] %v7332_v42  ;;  %v7337_v36 = vld [vmem:[%s8011_s2 + $0x268] sm:$0xff] }
 0x1b8   :  { %8165 = vst [vmem:[#allocation46_spill] sm:$0xff] %v7337_v36 }
 0x1ba   :  { %851 = vmatmul.mubr.f32.gmra.mrb[98].mxu1 %v7319_v26  ;;  %v7345_v26 = vld [vmem:[%s8011_s2 + $0x260] sm:$0xff] }
 0x1bb   :  { %5524 = vmatprep.mubr.msk.f32.mxu1 %vm455_vm0, %v7324_v22  ;;  %8166 = vst [vmem:[#allocation47_spill] sm:$0xff] %v7345_v26  ;;  %v7350_v22 = vld [vmem:[%s8011_s2 + $0x278] sm:$0xff] }
 0x1bc   :  { %8167 = vst [vmem:[#allocation48_spill] sm:$0xff] %v7350_v22 }
 0x1be   :  { %856 = vmatmul.mubr.f32.gmra.mrb[100].mxu1 %v7332_v42  ;;  %v7358_v42 = vld [vmem:[%s8011_s2 + $0x270] sm:$0xff] }
 0x1bf   :  { %5525 = vmatprep.mubr.msk.f32.mxu1 %vm455_vm0, %v7337_v36  ;;  %8168 = vst [vmem:[#allocation49_spill] sm:$0xff] %v7358_v42  ;;  %v7363_v36 = vld [vmem:[%s8011_s2 + $0x288] sm:$0xff] }
 0x1c0   :  { %8169 = vst [vmem:[#allocation50_spill] sm:$0xff] %v7363_v36 }
 0x1c2   :  { %861 = vmatmul.mubr.f32.gmra.mrb[102].mxu1 %v7345_v26  ;;  %v7371_v26 = vld [vmem:[%s8011_s2 + $0x280] sm:$0xff] }
 0x1c3   :  { %5526 = vmatprep.mubr.msk.f32.mxu1 %vm455_vm0, %v7350_v22  ;;  %8170 = vst [vmem:[#allocation51_spill] sm:$0xff] %v7371_v26  ;;  %v7376_v22 = vld [vmem:[%s8011_s2 + $0x298] sm:$0xff] }
 0x1c4   :  { %8171 = vst [vmem:[#allocation52_spill] sm:$0xff] %v7376_v22 }
 0x1c6   :  { %866 = vmatmul.mubr.f32.gmra.mrb[104].mxu1 %v7358_v42  ;;  %v7384_v42 = vld [vmem:[%s8011_s2 + $0x290] sm:$0xff] }
 0x1c7   :  { %5527 = vmatprep.mubr.msk.f32.mxu1 %vm455_vm0, %v7363_v36  ;;  %8172 = vst [vmem:[#allocation53_spill] sm:$0xff] %v7384_v42  ;;  %v7389_v36 = vld [vmem:[%s8011_s2 + $0x2a8] sm:$0xff] }
 0x1c8   :  { %8173 = vst [vmem:[#allocation54_spill] sm:$0xff] %v7389_v36 }
 0x1ca   :  { %871 = vmatmul.mubr.f32.gmra.mrb[106].mxu1 %v7371_v26  ;;  %v7397_v26 = vld [vmem:[%s8011_s2 + $0x2a0] sm:$0xff] }
 0x1cb   :  { %5528 = vmatprep.mubr.msk.f32.mxu1 %vm455_vm0, %v7376_v22  ;;  %8174 = vst [vmem:[#allocation55_spill] sm:$0xff] %v7397_v26  ;;  %v7402_v22 = vld [vmem:[%s8011_s2 + $0x2b8] sm:$0xff] }
 0x1cc   :  { %8175 = vst [vmem:[#allocation56_spill] sm:$0xff] %v7402_v22 }
 0x1ce   :  { %876 = vmatmul.mubr.f32.gmra.mrb[108].mxu1 %v7384_v42  ;;  %v7410_v42 = vld [vmem:[%s8011_s2 + $0x2b0] sm:$0xff] }
 0x1cf   :  { %5529 = vmatprep.mubr.msk.f32.mxu1 %vm455_vm0, %v7389_v36  ;;  %8176 = vst [vmem:[#allocation57_spill] sm:$0xff] %v7410_v42  ;;  %v7415_v36 = vld [vmem:[%s8011_s2 + $0x2c8] sm:$0xff] }
 0x1d0   :  { %8177 = vst [vmem:[#allocation58_spill] sm:$0xff] %v7415_v36 }
 0x1d2   :  { %881 = vmatmul.mubr.f32.gmra.mrb[110].mxu1 %v7397_v26  ;;  %v7423_v26 = vld [vmem:[%s8011_s2 + $0x2c0] sm:$0xff] }
 0x1d3   :  { %5530 = vmatprep.mubr.msk.f32.mxu1 %vm455_vm0, %v7402_v22  ;;  %8178 = vst [vmem:[#allocation59_spill] sm:$0xff] %v7423_v26  ;;  %v7428_v22 = vld [vmem:[%s8011_s2 + $0x2d8] sm:$0xff] }
 0x1d4   :  { %8179 = vst [vmem:[#allocation60_spill] sm:$0xff] %v7428_v22 }
 0x1d6   :  { %886 = vmatmul.mubr.f32.gmra.mrb[112].mxu1 %v7410_v42  ;;  %v7436_v42 = vld [vmem:[%s8011_s2 + $0x2d0] sm:$0xff] }
 0x1d7   :  { %5531 = vmatprep.mubr.msk.f32.mxu1 %vm455_vm0, %v7415_v36  ;;  %8180 = vst [vmem:[#allocation61_spill] sm:$0xff] %v7436_v42  ;;  %v7441_v36 = vld [vmem:[%s8011_s2 + $0x2e8] sm:$0xff] }
 0x1d8   :  { %8181 = vst [vmem:[#allocation62_spill] sm:$0xff] %v7441_v36 }
 0x1da   :  { %891 = vmatmul.mubr.f32.gmra.mrb[114].mxu1 %v7423_v26  ;;  %v7449_v26 = vld [vmem:[%s8011_s2 + $0x2e0] sm:$0xff] }
 0x1db   :  { %5532 = vmatprep.mubr.msk.f32.mxu1 %vm455_vm0, %v7428_v22  ;;  %8182 = vst [vmem:[#allocation63_spill] sm:$0xff] %v7449_v26  ;;  %v7454_v22 = vld [vmem:[%s8011_s2 + $0x2f8] sm:$0xff] }
 0x1dc   :  { %8183 = vst [vmem:[#allocation64_spill] sm:$0xff] %v7454_v22 }
 0x1de   :  { %896 = vmatmul.mubr.f32.gmra.mrb[116].mxu1 %v7436_v42  ;;  %v7462_v42 = vld [vmem:[%s8011_s2 + $0x2f0] sm:$0xff] }
 0x1df   :  { %5533 = vmatprep.mubr.msk.f32.mxu1 %vm455_vm0, %v7441_v36  ;;  %8184 = vst [vmem:[#allocation65_spill] sm:$0xff] %v7462_v42  ;;  %v7467_v36 = vld [vmem:[%s8011_s2 + $0x308] sm:$0xff] }
 0x1e0   :  { %8185 = vst [vmem:[#allocation66_spill] sm:$0xff] %v7467_v36 }
 0x1e2   :  { %901 = vmatmul.mubr.f32.gmra.mrb[118].mxu1 %v7449_v26  ;;  %v7475_v26 = vld [vmem:[%s8011_s2 + $0x300] sm:$0xff] }
 0x1e3   :  { %5534 = vmatprep.mubr.msk.f32.mxu1 %vm455_vm0, %v7454_v22  ;;  %8186 = vst [vmem:[#allocation67_spill] sm:$0xff] %v7475_v26  ;;  %v7480_v22 = vld [vmem:[%s8011_s2 + $0x318] sm:$0xff] }
 0x1e4   :  { %8187 = vst [vmem:[#allocation68_spill] sm:$0xff] %v7480_v22 }
 0x1e6   :  { %906 = vmatmul.mubr.f32.gmra.mrb[120].mxu1 %v7462_v42  ;;  %v7488_v42 = vld [vmem:[%s8011_s2 + $0x310] sm:$0xff] }
 0x1e7   :  { %5535 = vmatprep.mubr.msk.f32.mxu1 %vm455_vm0, %v7467_v36  ;;  %8188 = vst [vmem:[#allocation69_spill] sm:$0xff] %v7488_v42 }
 0x1ea   :  { %911 = vmatmul.mubr.f32.gmra.mrb[122].mxu1 %v7475_v26 }
 0x1eb   :  { %5536 = vmatprep.mubr.msk.f32.mxu1 %vm455_vm0, %v7480_v22  ;;  %v7495_v22 = vld [vmem:[%s8012_s3 + $0x10] sm:$0xff] }
 0x1ec   :  { %8189 = vst [vmem:[#allocation70_spill] sm:$0xff] %v7495_v22 }
 0x1ee   :  { %916 = vmatmul.mubr.f32.gmra.mrb[124].mxu1 %v7488_v42 }
 0x1fd   :  { %v672_v36 = vpop.f32.mrb[26].mxu1 }
 0x1fe   :  { %v674_v21 = vpop.f32.mrb[27].mxu1 }
 0x201   :  { %v677_v11 = vpop.f32.mrb[28].mxu1 }
 0x202   :  { %v679_v7 = vpop.f32.mrb[29].mxu1 }
 0x205   :  { %v682_v39 = vpop.f32.mrb[30].mxu1 }
 0x206   :  { %v684_v37 = vpop.f32.mrb[31].mxu1  ;;  %6026 = vmatprep.mubr.msk.f32.mxu0 %vm924_vm1, %v682_v39  ;;  %v7504_v39 = vld [vmem:[%s8012_s3 + $0x18] sm:$0xff] }
 0x207   :  { %8190 = vst [vmem:[#allocation71_spill] sm:$0xff] %v7504_v39 }
 0x209   :  { %v687_v26 = vpop.f32.mrb[32].mxu1 }
 0x20a   :  { %6027 = vmatmul.mubr.msk.f32.vlgmr.msra.gmra.mrb[10].mxu0 %vm924_vm1, %v687_v26  ;;  %v689_v32 = vpop.f32.mrb[33].mxu1 }
 0x20b   :  { %6031 = vmatprep.mubr.msk.f32.mxu0 %vm924_vm1, %v672_v36  ;;  %6030 = vmatpush3.msra.mxu0 %v7174_v44 }
 0x20c   :  { %6034 = vmatprep.subr.mxu0 %v7495_v22 }
 0x20d   :  { %v692_v7 = vpop.f32.mrb[34].mxu1 }
 0x20e   :  { %v694_v21 = vpop.f32.mrb[35].mxu1 }
 0x20f   :  { %v7513_v21 = vld [vmem:[%s8012_s3 + $0x20] sm:$0xff] }
 0x210   :  { %8191 = vst [vmem:[#allocation72_spill] sm:$0xff] %v7513_v21 }
 0x211   :  { %v697_v37 = vpop.f32.mrb[36].mxu1 }
 0x212   :  { %6032 = vmatmul.mubr.msk.f32.vlgmr.msra.gmra.mrb[10].mxu0 %vm924_vm1, %v677_v11  ;;  %v699_v42 = vpop.f32.mrb[37].mxu1 }
 0x213   :  { %6035 = vmatpush3.msra.mxu0 %v7495_v22  ;;  %6036 = vmatprep.mubr.msk.f32.mxu0 %vm924_vm1, %v692_v7 }
 0x214   :  { %6039 = vmatprep.subr.mxu0 %v7504_v39 }
 0x215   :  { %v702_v32 = vpop.f32.mrb[38].mxu1 }
 0x216   :  { %v704_v36 = vpop.f32.mrb[39].mxu1 }
 0x217   :  { %v7522_v36 = vld [vmem:[%s8012_s3 + $0x28] sm:$0xff] }
 0x218   :  { %8192 = vst [vmem:[#allocation73_spill] sm:$0xff] %v7522_v36 }
 0x219   :  { %v707_v26 = vpop.f32.mrb[40].mxu1 }
 0x21a   :  { %6037 = vmatmul.mubr.msk.f32.vlgmr.msra.gmra.mrb[10].mxu0 %vm924_vm1, %v697_v37  ;;  %v709_v44 = vpop.f32.mrb[41].mxu1 }
 0x21b   :  { %6040 = vmatpush3.msra.mxu0 %v7504_v39  ;;  %6041 = vmatprep.mubr.msk.f32.mxu0 %vm924_vm1, %v702_v32 }
 0x21c   :  { %6044 = vmatprep.subr.mxu0 %v7513_v21 }
 0x21d   :  { %v712_v11 = vpop.f32.mrb[42].mxu1 }
 0x21e   :  { %v714_v42 = vpop.f32.mrb[43].mxu1 }
 0x21f   :  { %v7531_v42 = vld [vmem:[%s8012_s3 + $0x30] sm:$0xff] }
 0x220   :  { %8193 = vst [vmem:[#allocation74_spill] sm:$0xff] %v7531_v42 }
 0x221   :  { %v717_v7 = vpop.f32.mrb[44].mxu1 }
 0x222   :  { %6042 = vmatmul.mubr.msk.f32.vlgmr.msra.gmra.mrb[10].mxu0 %vm924_vm1, %v707_v26  ;;  %v719_v22 = vpop.f32.mrb[45].mxu1 }
 0x223   :  { %6045 = vmatpush3.msra.mxu0 %v7513_v21  ;;  %6046 = vmatprep.mubr.msk.f32.mxu0 %vm924_vm1, %v712_v11 }
 0x224   :  { %6049 = vmatprep.subr.mxu0 %v7522_v36 }
 0x225   :  { %v722_v44 = vpop.f32.mrb[46].mxu1 }
 0x226   :  { %v724_v37 = vpop.f32.mrb[47].mxu1 }
 0x227   :  { %v7540_v37 = vld [vmem:[%s8012_s3 + $0x38] sm:$0xff] }
 0x228   :  { %8194 = vst [vmem:[#allocation75_spill] sm:$0xff] %v7540_v37 }
 0x229   :  { %v727_v32 = vpop.f32.mrb[48].mxu1 }
 0x22a   :  { %6047 = vmatmul.mubr.msk.f32.vlgmr.msra.gmra.mrb[10].mxu0 %vm924_vm1, %v717_v7  ;;  %v729_v39 = vpop.f32.mrb[49].mxu1 }
 0x22b   :  { %6050 = vmatpush3.msra.mxu0 %v7522_v36  ;;  %6051 = vmatprep.mubr.msk.f32.mxu0 %vm924_vm1, %v722_v44 }
 0x22c   :  { %6054 = vmatprep.subr.mxu0 %v7531_v42 }
 0x22d   :  { %v732_v22 = vpop.f32.mrb[50].mxu1 }
 0x22e   :  { %v734_v26 = vpop.f32.mrb[51].mxu1 }
 0x22f   :  { %v7549_v26 = vld [vmem:[%s8012_s3 + $0x40] sm:$0xff] }
 0x230   :  { %8195 = vst [vmem:[#allocation76_spill] sm:$0xff] %v7549_v26 }
 0x231   :  { %v737_v11 = vpop.f32.mrb[52].mxu1 }
 0x232   :  { %6052 = vmatmul.mubr.msk.f32.vlgmr.msra.gmra.mrb[10].mxu0 %vm924_vm1, %v727_v32  ;;  %v739_v21 = vpop.f32.mrb[53].mxu1 }
 0x233   :  { %6055 = vmatpush3.msra.mxu0 %v7531_v42  ;;  %6056 = vmatprep.mubr.msk.f32.mxu0 %vm924_vm1, %v732_v22 }
 0x234   :  { %6059 = vmatprep.subr.mxu0 %v7540_v37 }
 0x235   :  { %v742_v39 = vpop.f32.mrb[54].mxu1 }
 0x236   :  { %v744_v7 = vpop.f32.mrb[55].mxu1 }
 0x237   :  { %v7558_v7 = vld [vmem:[%s8012_s3 + $0x48] sm:$0xff] }
 0x238   :  { %8196 = vst [vmem:[#allocation77_spill] sm:$0xff] %v7558_v7 }
 0x239   :  { %v747_v44 = vpop.f32.mrb[56].mxu1 }
 0x23a   :  { %6057 = vmatmul.mubr.msk.f32.vlgmr.msra.gmra.mrb[10].mxu0 %vm924_vm1, %v737_v11  ;;  %v749_v36 = vpop.f32.mrb[57].mxu1 }
 0x23b   :  { %6060 = vmatpush3.msra.mxu0 %v7540_v37  ;;  %6061 = vmatprep.mubr.msk.f32.mxu0 %vm924_vm1, %v742_v39 }
 0x23c   :  { %6064 = vmatprep.subr.mxu0 %v7549_v26 }
 0x23d   :  { %v752_v21 = vpop.f32.mrb[58].mxu1 }
 0x23e   :  { %v754_v32 = vpop.f32.mrb[59].mxu1 }
 0x23f   :  { %v7567_v32 = vld [vmem:[%s8012_s3 + $0x50] sm:$0xff] }
 0x240   :  { %8197 = vst [vmem:[#allocation78_spill] sm:$0xff] %v7567_v32 }
 0x241   :  { %v757_v22 = vpop.f32.mrb[60].mxu1 }
 0x242   :  { %6062 = vmatmul.mubr.msk.f32.vlgmr.msra.gmra.mrb[10].mxu0 %vm924_vm1, %v747_v44  ;;  %v759_v42 = vpop.f32.mrb[61].mxu1 }
 0x243   :  { %6065 = vmatpush3.msra.mxu0 %v7549_v26  ;;  %6066 = vmatprep.mubr.msk.f32.mxu0 %vm924_vm1, %v752_v21 }
 0x244   :  { %6069 = vmatprep.subr.mxu0 %v7558_v7 }
 0x245   :  { %v762_v36 = vpop.f32.mrb[62].mxu1 }
 0x246   :  { %v764_v11 = vpop.f32.mrb[63].mxu1 }
 0x247   :  { %v7576_v11 = vld [vmem:[%s8012_s3 + $0x58] sm:$0xff] }
 0x248   :  { %8198 = vst [vmem:[#allocation79_spill] sm:$0xff] %v7576_v11 }
 0x249   :  { %v767_v39 = vpop.f32.mrb[64].mxu1 }
 0x24a   :  { %6067 = vmatmul.mubr.msk.f32.vlgmr.msra.gmra.mrb[10].mxu0 %vm924_vm1, %v757_v22  ;;  %v769_v37 = vpop.f32.mrb[65].mxu1 }
 0x24b   :  { %6070 = vmatpush3.msra.mxu0 %v7558_v7  ;;  %6071 = vmatprep.mubr.msk.f32.mxu0 %vm924_vm1, %v762_v36 }
 0x24c   :  { %6074 = vmatprep.subr.mxu0 %v7567_v32 }
 0x24d   :  { %v772_v42 = vpop.f32.mrb[66].mxu1 }
 0x24e   :  { %v774_v44 = vpop.f32.mrb[67].mxu1 }
 0x24f   :  { %v7585_v44 = vld [vmem:[%s8012_s3 + $0x60] sm:$0xff] }
 0x250   :  { %8199 = vst [vmem:[#allocation80_spill] sm:$0xff] %v7585_v44 }
 0x251   :  { %v777_v21 = vpop.f32.mrb[68].mxu1 }
 0x252   :  { %6072 = vmatmul.mubr.msk.f32.vlgmr.msra.gmra.mrb[10].mxu0 %vm924_vm1, %v767_v39  ;;  %v779_v26 = vpop.f32.mrb[69].mxu1 }
 0x253   :  { %6075 = vmatpush3.msra.mxu0 %v7567_v32  ;;  %6076 = vmatprep.mubr.msk.f32.mxu0 %vm924_vm1, %v772_v42 }
 0x254   :  { %6079 = vmatprep.subr.mxu0 %v7576_v11 }
 0x255   :  { %v782_v37 = vpop.f32.mrb[70].mxu1 }
 0x256   :  { %v784_v22 = vpop.f32.mrb[71].mxu1 }
 0x257   :  { %v7594_v22 = vld [vmem:[%s8012_s3 + $0x68] sm:$0xff] }
 0x258   :  { %8200 = vst [vmem:[#allocation81_spill] sm:$0xff] %v7594_v22 }
 0x259   :  { %v787_v36 = vpop.f32.mrb[72].mxu1 }
 0x25a   :  { %6077 = vmatmul.mubr.msk.f32.vlgmr.msra.gmra.mrb[10].mxu0 %vm924_vm1, %v777_v21  ;;  %v789_v7 = vpop.f32.mrb[73].mxu1 }
 0x25b   :  { %6080 = vmatpush3.msra.mxu0 %v7576_v11  ;;  %6081 = vmatprep.mubr.msk.f32.mxu0 %vm924_vm1, %v782_v37 }
 0x25c   :  { %6084 = vmatprep.subr.mxu0 %v7585_v44 }
 0x25d   :  { %v792_v26 = vpop.f32.mrb[74].mxu1 }
 0x25e   :  { %v794_v39 = vpop.f32.mrb[75].mxu1 }
 0x25f   :  { %v7603_v39 = vld [vmem:[%s8012_s3 + $0x70] sm:$0xff] }
 0x260   :  { %8201 = vst [vmem:[#allocation82_spill] sm:$0xff] %v7603_v39 }
 0x261   :  { %v797_v42 = vpop.f32.mrb[76].mxu1 }
 0x262   :  { %6082 = vmatmul.mubr.msk.f32.vlgmr.msra.gmra.mrb[10].mxu0 %vm924_vm1, %v787_v36  ;;  %v799_v32 = vpop.f32.mrb[77].mxu1 }
 0x263   :  { %6085 = vmatpush3.msra.mxu0 %v7585_v44  ;;  %6086 = vmatprep.mubr.msk.f32.mxu0 %vm924_vm1, %v792_v26 }
 0x264   :  { %6089 = vmatprep.subr.mxu0 %v7594_v22 }
 0x265   :  { %v802_v7 = vpop.f32.mrb[78].mxu1 }
 0x266   :  { %v804_v21 = vpop.f32.mrb[79].mxu1 }
 0x267   :  { %v7612_v21 = vld [vmem:[%s8012_s3 + $0x78] sm:$0xff] }
 0x268   :  { %8202 = vst [vmem:[#allocation83_spill] sm:$0xff] %v7612_v21 }
 0x269   :  { %v807_v37 = vpop.f32.mrb[80].mxu1 }
 0x26a   :  { %6087 = vmatmul.mubr.msk.f32.vlgmr.msra.gmra.mrb[10].mxu0 %vm924_vm1, %v797_v42  ;;  %v809_v11 = vpop.f32.mrb[81].mxu1 }
 0x26b   :  { %6090 = vmatpush3.msra.mxu0 %v7594_v22  ;;  %6091 = vmatprep.mubr.msk.f32.mxu0 %vm924_vm1, %v802_v7 }
 0x26c   :  { %6094 = vmatprep.subr.mxu0 %v7603_v39 }
 0x26d   :  { %v812_v32 = vpop.f32.mrb[82].mxu1 }
 0x26e   :  { %v814_v36 = vpop.f32.mrb[83].mxu1 }
 0x26f   :  { %v7621_v36 = vld [vmem:[%s8012_s3 + $0x80] sm:$0xff] }
 0x270   :  { %8203 = vst [vmem:[#allocation84_spill] sm:$0xff] %v7621_v36 }
 0x271   :  { %v817_v26 = vpop.f32.mrb[84].mxu1 }
 0x272   :  { %6092 = vmatmul.mubr.msk.f32.vlgmr.msra.gmra.mrb[10].mxu0 %vm924_vm1, %v807_v37  ;;  %v819_v44 = vpop.f32.mrb[85].mxu1 }
 0x273   :  { %6095 = vmatpush3.msra.mxu0 %v7603_v39  ;;  %6096 = vmatprep.mubr.msk.f32.mxu0 %vm924_vm1, %v812_v32 }
 0x274   :  { %6099 = vmatprep.subr.mxu0 %v7612_v21 }
 0x275   :  { %v822_v11 = vpop.f32.mrb[86].mxu1 }
 0x276   :  { %v824_v42 = vpop.f32.mrb[87].mxu1 }
 0x277   :  { %v7630_v42 = vld [vmem:[%s8012_s3 + $0x88] sm:$0xff] }
 0x278   :  { %8204 = vst [vmem:[#allocation85_spill] sm:$0xff] %v7630_v42 }
 0x279   :  { %v827_v7 = vpop.f32.mrb[88].mxu1 }
 0x27a   :  { %6097 = vmatmul.mubr.msk.f32.vlgmr.msra.gmra.mrb[10].mxu0 %vm924_vm1, %v817_v26  ;;  %v829_v22 = vpop.f32.mrb[89].mxu1 }
 0x27b   :  { %6100 = vmatpush3.msra.mxu0 %v7612_v21  ;;  %6101 = vmatprep.mubr.msk.f32.mxu0 %vm924_vm1, %v822_v11 }
 0x27c   :  { %6104 = vmatprep.subr.mxu0 %v7621_v36 }
 0x27d   :  { %v832_v44 = vpop.f32.mrb[90].mxu1 }
 0x27e   :  { %v834_v37 = vpop.f32.mrb[91].mxu1 }
 0x27f   :  { %v7639_v37 = vld [vmem:[%s8012_s3 + $0x90] sm:$0xff] }
 0x280   :  { %8205 = vst [vmem:[#allocation86_spill] sm:$0xff] %v7639_v37 }
 0x281   :  { %v837_v32 = vpop.f32.mrb[92].mxu1 }
 0x282   :  { %6102 = vmatmul.mubr.msk.f32.vlgmr.msra.gmra.mrb[10].mxu0 %vm924_vm1, %v827_v7  ;;  %v839_v39 = vpop.f32.mrb[93].mxu1 }
 0x283   :  { %6105 = vmatpush3.msra.mxu0 %v7621_v36  ;;  %6106 = vmatprep.mubr.msk.f32.mxu0 %vm924_vm1, %v832_v44 }
 0x284   :  { %6109 = vmatprep.subr.mxu0 %v7630_v42 }
 0x285   :  { %v842_v22 = vpop.f32.mrb[94].mxu1 }
 0x286   :  { %v844_v26 = vpop.f32.mrb[95].mxu1 }
 0x287   :  { %v7648_v26 = vld [vmem:[%s8012_s3 + $0x98] sm:$0xff] }
 0x288   :  { %8206 = vst [vmem:[#allocation87_spill] sm:$0xff] %v7648_v26 }
 0x289   :  { %v847_v11 = vpop.f32.mrb[96].mxu1 }
 0x28a   :  { %6107 = vmatmul.mubr.msk.f32.vlgmr.msra.gmra.mrb[10].mxu0 %vm924_vm1, %v837_v32  ;;  %v849_v21 = vpop.f32.mrb[97].mxu1 }
 0x28b   :  { %6110 = vmatpush3.msra.mxu0 %v7630_v42  ;;  %6111 = vmatprep.mubr.msk.f32.mxu0 %vm924_vm1, %v842_v22 }
 0x28c   :  { %6114 = vmatprep.subr.mxu0 %v7639_v37 }
 0x28d   :  { %v852_v39 = vpop.f32.mrb[98].mxu1 }
 0x28e   :  { %v854_v7 = vpop.f32.mrb[99].mxu1 }
 0x28f   :  { %v7657_v7 = vld [vmem:[%s8012_s3 + $0xa0] sm:$0xff] }
 0x290   :  { %8207 = vst [vmem:[#allocation88_spill] sm:$0xff] %v7657_v7 }
 0x291   :  { %v857_v44 = vpop.f32.mrb[100].mxu1 }
 0x292   :  { %6112 = vmatmul.mubr.msk.f32.vlgmr.msra.gmra.mrb[10].mxu0 %vm924_vm1, %v847_v11  ;;  %v859_v36 = vpop.f32.mrb[101].mxu1 }
 0x293   :  { %6115 = vmatpush3.msra.mxu0 %v7639_v37  ;;  %6116 = vmatprep.mubr.msk.f32.mxu0 %vm924_vm1, %v852_v39 }
 0x294   :  { %6119 = vmatprep.subr.mxu0 %v7648_v26 }
 0x295   :  { %v862_v21 = vpop.f32.mrb[102].mxu1 }
 0x296   :  { %v864_v32 = vpop.f32.mrb[103].mxu1 }
 0x297   :  { %v7666_v32 = vld [vmem:[%s8012_s3 + $0xa8] sm:$0xff] }
 0x298   :  { %8208 = vst [vmem:[#allocation89_spill] sm:$0xff] %v7666_v32 }
 0x299   :  { %v867_v22 = vpop.f32.mrb[104].mxu1 }
 0x29a   :  { %6117 = vmatmul.mubr.msk.f32.vlgmr.msra.gmra.mrb[10].mxu0 %vm924_vm1, %v857_v44  ;;  %v869_v42 = vpop.f32.mrb[105].mxu1 }
 0x29b   :  { %6120 = vmatpush3.msra.mxu0 %v7648_v26  ;;  %6121 = vmatprep.mubr.msk.f32.mxu0 %vm924_vm1, %v862_v21 }
 0x29c   :  { %6124 = vmatprep.subr.mxu0 %v7657_v7 }
 0x29d   :  { %v872_v36 = vpop.f32.mrb[106].mxu1 }
 0x29e   :  { %v874_v11 = vpop.f32.mrb[107].mxu1 }
 0x29f   :  { %v7675_v11 = vld [vmem:[%s8012_s3 + $0xb0] sm:$0xff] }
 0x2a0   :  { %8209 = vst [vmem:[#allocation90_spill] sm:$0xff] %v7675_v11 }
 0x2a1   :  { %v877_v39 = vpop.f32.mrb[108].mxu1 }
 0x2a2   :  { %6122 = vmatmul.mubr.msk.f32.vlgmr.msra.gmra.mrb[10].mxu0 %vm924_vm1, %v867_v22  ;;  %v879_v37 = vpop.f32.mrb[109].mxu1 }
 0x2a3   :  { %6125 = vmatpush3.msra.mxu0 %v7657_v7  ;;  %6126 = vmatprep.mubr.msk.f32.mxu0 %vm924_vm1, %v872_v36 }
 0x2a4   :  { %6129 = vmatprep.subr.mxu0 %v7666_v32 }
 0x2a5   :  { %v882_v42 = vpop.f32.mrb[110].mxu1 }
 0x2a6   :  { %v884_v44 = vpop.f32.mrb[111].mxu1 }
 0x2a7   :  { %v7684_v44 = vld [vmem:[%s8012_s3 + $0xb8] sm:$0xff] }
 0x2a9   :  { %v887_v21 = vpop.f32.mrb[112].mxu1 }
 0x2aa   :  { %6127 = vmatmul.mubr.msk.f32.vlgmr.msra.gmra.mrb[10].mxu0 %vm924_vm1, %v877_v39  ;;  %v889_v26 = vpop.f32.mrb[113].mxu1 }
 0x2ab   :  { %6130 = vmatpush3.msra.mxu0 %v7666_v32  ;;  %6131 = vmatprep.mubr.msk.f32.mxu0 %vm924_vm1, %v882_v42 }
 0x2ac   :  { %6134 = vmatprep.subr.mxu0 %v7675_v11 }
 0x2ad   :  { %v892_v37 = vpop.f32.mrb[114].mxu1 }
 0x2ae   :  { %v894_v22 = vpop.f32.mrb[115].mxu1 }
 0x2af   :  { %v7693_v22 = vld [vmem:[%s8012_s3 + $0xc0] sm:$0xff] }
 0x2b1   :  { %v897_v36 = vpop.f32.mrb[116].mxu1 }
 0x2b2   :  { %6132 = vmatmul.mubr.msk.f32.vlgmr.msra.gmra.mrb[10].mxu0 %vm924_vm1, %v887_v21  ;;  %v899_v7 = vpop.f32.mrb[117].mxu1 }
 0x2b3   :  { %6135 = vmatpush3.msra.mxu0 %v7675_v11  ;;  %6136 = vmatprep.mubr.msk.f32.mxu0 %vm924_vm1, %v892_v37  ;;  %v8210_v11 = vmov 0.0|0.0  }
 0x2b4   :  { %6139 = vmatprep.subr.mxu0 %v7684_v44 }
 0x2b5   :  { %v902_v26 = vpop.f32.mrb[118].mxu1 }
 0x2b6   :  { %v904_v39 = vpop.f32.mrb[119].mxu1 }
 0x2b9   :  { %v907_v42 = vpop.f32.mrb[120].mxu1 }
 0x2ba   :  { %6137 = vmatmul.mubr.msk.f32.vlgmr.msra.gmra.mrb[10].mxu0 %vm924_vm1, %v897_v36  ;;  %v909_v32 = vpop.f32.mrb[121].mxu1  ;;  %v6556_v36 = vld [vmem:[%s8011_s2 + $0x8] sm:$0xff] }
 0x2bb   :  { %6140 = vmatpush3.msra.mxu0 %v7684_v44  ;;  %6141 = vmatprep.mubr.msk.f32.mxu0 %vm924_vm1, %v902_v26  ;;  %v8211_v32 = vpack.c.bf16 %v6984_v17, %v6991_v20  ;;  %v8212_v26 = vpack.c.bf16 %v7003_v24, %v7010_v27  ;;  %v8214_v17 = vpack.c.bf16 %v7041_v38, %v7048_v41  ;;  %v8256_v38 = vld [vmem:[#allocation42_spill] sm:$0xff]  ;;  %v8257_v41 = vld [vmem:[#allocation43_spill] sm:$0xff] }
 0x2bc   :  { %6144 = vmatprep.subr.mxu0 %v7693_v22  ;;  %v8215_v20 = vpack.c.bf16 %v7060_v10, %v7067_v15  ;;  %v8216_v24 = vpack.c.bf16 %v7079_v28, %v7086_v40  ;;  %v8217_v27 = vpack.c.bf16 %v7091_v19, %v7100_v6  ;;  %v8258_v6 = vld [vmem:[#allocation44_spill] sm:$0xff]  ;;  %v8259_v10 = vld [vmem:[#allocation45_spill] sm:$0xff]  ;;  %v8260_v15 = vld [vmem:[#allocation46_spill] sm:$0xff] }
 0x2bd   :  { %v912_v7 = vpop.f32.mrb[122].mxu1  ;;  %v8261_v28 = vld [vmem:[#allocation47_spill] sm:$0xff]  ;;  %v8263_v40 = vld [vmem:[#allocation49_spill] sm:$0xff] }
 0x2be   :  { %v914_v21 = vpop.f32.mrb[123].mxu1  ;;  %v8265_v19 = vld [vmem:[#allocation51_spill] sm:$0xff] }
 0x2bf   :  { %v8269_v21 = vld [vmem:[#allocation55_spill] sm:$0xff] }
 0x2c1   :  { %v917_v37 = vpop.f32.mrb[124].mxu1 }
 0x2c2   :  { %6142 = vmatmul.mubr.msk.f32.vlgmr.msra.gmra.mrb[10].mxu0 %vm924_vm1, %v907_v42  ;;  %v919_v39 = vpop.f32.mrb[125].mxu1  ;;  %v8213_v42 = vpack.c.bf16 %v7022_v31, %v7029_v34  ;;  %v8218_v31 = vpack.c.bf16 %v7110_v14, %v7119_v29  ;;  %v8219_v34 = vpack.c.bf16 %v7132_v35, %v7141_v33  ;;  %v8254_v29 = vld [vmem:[#allocation40_spill] sm:$0xff]  ;;  %v8264_v14 = vld [vmem:[#allocation50_spill] sm:$0xff] }
 0x2c3   :  { %6145 = vmatpush3.msra.mxu0 %v7693_v22  ;;  %6146 = vmatprep.mubr.msk.f32.mxu0 %vm924_vm1, %v912_v7  ;;  %v8262_v33 = vld [vmem:[#allocation48_spill] sm:$0xff]  ;;  %v8268_v7 = vld [vmem:[#allocation54_spill] sm:$0xff]  ;;  %v8271_v39 = vld [vmem:[#allocation57_spill] sm:$0xff] }
 0x2c4   :  { %6333 = vmatprep.subr.bf16.mxu0 %v8210_v11  ;;  %v8266_v35 = vld [vmem:[#allocation52_spill] sm:$0xff] }
 0x2ca   :  { %6147 = vmatmul.mubr.msk.f32.vlgmr.msra.gmra.mrb[10].mxu0 %vm924_vm1, %v917_v37  ;;  %v8270_v37 = vld [vmem:[#allocation56_spill] sm:$0xff] }
 0x2cb   :  { %6335 = vmatpush1.bf16.msra.mxu0 %v8211_v32  ;;  %5612 = vmatprep.mubr.msk.f32.mxu0 %vm455_vm0, %v6556_v36  ;;  %v7876_v32 = vld [vmem:[%s8013_s4] ss:$0 sm:$0xff]  ;;  %v8272_v36 = vld [vmem:[#allocation58_spill] sm:$0xff]  ;;  %s6582_s4 = smov [#allocation2]  }
 0x2cc   :  { %6336 = vmatprep.subr.bf16.mxu0 %v8210_v11  ;;  %s5476_s27 = sshll.u32 %s6582_s4, 4  ;;  %s5477_s27 = int_to_ptr.vmem [resolvable:$true] %s5476_s27 }
 0x2cd   :  { %s6557_s28 = scalar_lea.vmem %s5477_s27, 512  ;;  %p6562_p1 = scmp.lt.s32.totalorder %s5477_s27, %s5477_s27 }
 0x2ce   :  { %p6558_p0 = scmp.ne.s32.totalorder %s5477_s27, %s6557_s28  ;;  %p6563_p2 = scmp.lt.s32.totalorder %s6557_s28, %s6557_s28 }
 0x2cf   :  { %6338 = vmatpush1.bf16.msra.mxu0 %v8212_v26 }
 0x2d0   :  { %6339 = vmatprep.subr.bf16.mxu0 %v8210_v11  ;;  %p6564_p3 = por %p6563_p2, %p6562_p1 }
 0x2d2   :  { %p6565_p4 = pnand %p6564_p3, %p6558_p0 }
 0x2d3   :  { %6341 = vmatpush1.bf16.msra.mxu0 %v8213_v42 }
 0x2d4   :  { %6342 = vmatprep.subr.bf16.mxu0 %v8210_v11 }
 0x2d7   :  { %6344 = vmatpush1.bf16.msra.mxu0 %v8214_v17 }
 0x2d8   :  { %6345 = vmatprep.subr.bf16.mxu0 %v8210_v11 }
 0x2db   :  { %6347 = vmatpush1.bf16.msra.mxu0 %v8215_v20  ;;  %v8273_v20 = vld [vmem:[#allocation59_spill] sm:$0xff] }
 0x2dc   :  { %6348 = vmatprep.subr.bf16.mxu0 %v8210_v11 }
 0x2df   :  { %6350 = vmatpush1.bf16.msra.mxu0 %v8216_v24 }
 0x2e0   :  { %6351 = vmatprep.subr.bf16.mxu0 %v8210_v11 }
 0x2e3   :  { %6353 = vmatpush1.bf16.msra.mxu0 %v8217_v27  ;;  %v8274_v27 = vld [vmem:[#allocation60_spill] sm:$0xff] }
 0x2e4   :  { %6354 = vmatprep.subr.bf16.mxu0 %v8210_v11 }
 0x2e7   :  { %6356 = vmatpush1.bf16.msra.mxu0 %v8218_v31  ;;  %v8275_v31 = vld [vmem:[#allocation61_spill] sm:$0xff] }
 0x2e8   :  { %6357 = vmatprep.subr.bf16.mxu0 %v8210_v11  ;;  %v8267_v11 = vld [vmem:[#allocation53_spill] sm:$0xff] }
 0x2eb   :  { %6359 = vmatpush1.bf16.msra.mxu0 %v8219_v34  ;;  %v8276_v34 = vld [vmem:[#allocation62_spill] sm:$0xff] }
 0x2ee   :  { %3119 = vmatmul.mubr.f32.vlgmr.msra.gmra.mrb[12].mxu0 %v6787_v43  ;;  %v8220_v43 = vld [vmem:[#allocation5_spill] sm:$0xff] }
 0x2ef   :  { %5613 = vmatprep.mubr.msk.f32.mxu0 %vm455_vm0, %v6792_v45  ;;  %v8221_v45 = vld [vmem:[#allocation6_spill] sm:$0xff] }
 0x2f2   :  { %3124 = vmatmul.mubr.f32.gmra.mrb[14].mxu0 %v6800_v46  ;;  %v8222_v46 = vld [vmem:[#allocation7_spill] sm:$0xff] }
 0x2f3   :  { %5614 = vmatprep.mubr.msk.f32.mxu0 %vm455_vm0, %v6805_v47  ;;  %v8223_v47 = vld [vmem:[#allocation8_spill] sm:$0xff] }
 0x2f6   :  { %3129 = vmatmul.mubr.f32.gmra.mrb[16].mxu0 %v6813_v48  ;;  %v8224_v48 = vld [vmem:[#allocation9_spill] sm:$0xff] }
 0x2f7   :  { %5615 = vmatprep.mubr.msk.f32.mxu0 %vm455_vm0, %v6818_v49  ;;  %v8225_v49 = vld [vmem:[#allocation10_spill] sm:$0xff] }
 0x2fa   :  { %3134 = vmatmul.mubr.f32.gmra.mrb[18].mxu0 %v6826_v50  ;;  %v8226_v50 = vld [vmem:[#allocation11_spill] sm:$0xff] }
 0x2fb   :  { %5616 = vmatprep.mubr.msk.f32.mxu0 %vm455_vm0, %v6831_v51  ;;  %v8227_v51 = vld [vmem:[#allocation12_spill] sm:$0xff] }
 0x2fe   :  { %3139 = vmatmul.mubr.f32.gmra.mrb[20].mxu0 %v6839_v52  ;;  %v8228_v52 = vld [vmem:[#allocation13_spill] sm:$0xff] }
 0x2ff   :  { %5617 = vmatprep.mubr.msk.f32.mxu0 %vm455_vm0, %v6844_v53  ;;  %v8229_v53 = vld [vmem:[#allocation14_spill] sm:$0xff] }
 0x302   :  { %3144 = vmatmul.mubr.f32.gmra.mrb[22].mxu0 %v6852_v54  ;;  %v8230_v54 = vld [vmem:[#allocation15_spill] sm:$0xff] }
 0x303   :  { %5618 = vmatprep.mubr.msk.f32.mxu0 %vm455_vm0, %v6857_v55  ;;  %v8231_v55 = vld [vmem:[#allocation16_spill] sm:$0xff] }
 0x306   :  { %3149 = vmatmul.mubr.f32.gmra.mrb[24].mxu0 %v6865_v56  ;;  %v8232_v56 = vld [vmem:[#allocation17_spill] sm:$0xff] }
 0x307   :  { %5619 = vmatprep.mubr.msk.f32.mxu0 %vm455_vm0, %v6870_v57  ;;  %v8233_v57 = vld [vmem:[#allocation18_spill] sm:$0xff] }
 0x30a   :  { %3154 = vmatmul.mubr.f32.gmra.mrb[26].mxu0 %v6878_v58  ;;  %v8234_v58 = vld [vmem:[#allocation19_spill] sm:$0xff] }
 0x30b   :  { %5620 = vmatprep.mubr.msk.f32.mxu0 %vm455_vm0, %v6883_v59  ;;  %v8235_v59 = vld [vmem:[#allocation20_spill] sm:$0xff] }
 0x30e   :  { %3159 = vmatmul.mubr.f32.gmra.mrb[28].mxu0 %v6891_v60  ;;  %v8236_v60 = vld [vmem:[#allocation22_spill] sm:$0xff] }
 0x30f   :  { %5621 = vmatprep.mubr.msk.f32.mxu0 %vm455_vm0, %v6896_v61  ;;  %v8237_v61 = vld [vmem:[#allocation23_spill] sm:$0xff] }
 0x312   :  { %3164 = vmatmul.mubr.f32.gmra.mrb[30].mxu0 %v6904_v62  ;;  %v8238_v62 = vld [vmem:[#allocation24_spill] sm:$0xff] }
 0x313   :  { %5622 = vmatprep.mubr.msk.f32.mxu0 %vm455_vm0, %v6909_v63  ;;  %v8239_v63 = vld [vmem:[#allocation25_spill] sm:$0xff] }
 0x316   :  { %3169 = vmatmul.mubr.f32.gmra.mrb[32].mxu0 %v6917_v0  ;;  %v8240_v0 = vld [vmem:[#allocation26_spill] sm:$0xff] }
 0x317   :  { %5623 = vmatprep.mubr.msk.f32.mxu0 %vm455_vm0, %v6922_v1  ;;  %v8241_v1 = vld [vmem:[#allocation27_spill] sm:$0xff] }
 0x31a   :  { %3174 = vmatmul.mubr.f32.gmra.mrb[34].mxu0 %v6930_v2  ;;  %v8242_v2 = vld [vmem:[#allocation28_spill] sm:$0xff] }
 0x31b   :  { %5624 = vmatprep.mubr.msk.f32.mxu0 %vm455_vm0, %v6935_v3  ;;  %v8243_v3 = vld [vmem:[#allocation29_spill] sm:$0xff] }
 0x31e   :  { %3179 = vmatmul.mubr.f32.gmra.mrb[36].mxu0 %v6943_v4  ;;  %v8244_v4 = vld [vmem:[#allocation30_spill] sm:$0xff] }
 0x31f   :  { %5625 = vmatprep.mubr.msk.f32.mxu0 %vm455_vm0, %v6948_v5  ;;  %v8245_v5 = vld [vmem:[#allocation31_spill] sm:$0xff] }
 0x322   :  { %3184 = vmatmul.mubr.f32.gmra.mrb[38].mxu0 %v6956_v8  ;;  %v8246_v8 = vld [vmem:[#allocation32_spill] sm:$0xff] }
 0x323   :  { %5626 = vmatprep.mubr.msk.f32.mxu0 %vm455_vm0, %v6961_v9  ;;  %v8247_v9 = vld [vmem:[#allocation33_spill] sm:$0xff] }
 0x326   :  { %3189 = vmatmul.mubr.f32.gmra.mrb[40].mxu0 %v6969_v12  ;;  %v8248_v12 = vld [vmem:[#allocation34_spill] sm:$0xff] }
 0x327   :  { %5627 = vmatprep.mubr.msk.f32.mxu0 %vm455_vm0, %v6974_v13  ;;  %v8249_v13 = vld [vmem:[#allocation35_spill] sm:$0xff] }
 0x32a   :  { %3194 = vmatmul.mubr.f32.gmra.mrb[42].mxu0 %v6982_v16  ;;  %v8250_v16 = vld [vmem:[#allocation36_spill] sm:$0xff] }
 0x32b   :  { %5628 = vmatprep.mubr.msk.f32.mxu0 %vm455_vm0, %v6989_v18  ;;  %v8251_v18 = vld [vmem:[#allocation37_spill] sm:$0xff] }
 0x32e   :  { %3199 = vmatmul.mubr.f32.gmra.mrb[44].mxu0 %v7001_v23  ;;  %v8252_v23 = vld [vmem:[#allocation38_spill] sm:$0xff] }
 0x32f   :  { %5629 = vmatprep.mubr.msk.f32.mxu0 %vm455_vm0, %v7008_v25  ;;  %v8253_v25 = vld [vmem:[#allocation39_spill] sm:$0xff] }
 0x332   :  { %3204 = vmatmul.mubr.f32.gmra.mrb[46].mxu0 %v7020_v30  ;;  %v8255_v30 = vld [vmem:[#allocation41_spill] sm:$0xff] }
 0x333   :  { %5630 = vmatprep.mubr.msk.f32.mxu0 %vm455_vm0, %v8220_v43  ;;  %v8277_v43 = vld [vmem:[#allocation63_spill] sm:$0xff] }
 0x336   :  { %3209 = vmatmul.mubr.f32.gmra.mrb[48].mxu0 %v8221_v45  ;;  %v8278_v45 = vld [vmem:[#allocation64_spill] sm:$0xff] }
 0x337   :  { %5631 = vmatprep.mubr.msk.f32.mxu0 %vm455_vm0, %v8222_v46 }
 0x33a   :  { %3214 = vmatmul.mubr.f32.gmra.mrb[50].mxu0 %v8223_v47  ;;  %v8279_v47 = vld [vmem:[#allocation65_spill] sm:$0xff] }
 0x33b   :  { %5632 = vmatprep.mubr.msk.f32.mxu0 %vm455_vm0, %v8224_v48 }
 0x33e   :  { %3219 = vmatmul.mubr.f32.gmra.mrb[52].mxu0 %v8225_v49  ;;  %v8280_v49 = vld [vmem:[#allocation66_spill] sm:$0xff] }
 0x33f   :  { %5633 = vmatprep.mubr.msk.f32.mxu0 %vm455_vm0, %v8226_v50  ;;  %v8281_v50 = vld [vmem:[#allocation67_spill] sm:$0xff] }
 0x342   :  { %3224 = vmatmul.mubr.f32.gmra.mrb[54].mxu0 %v8227_v51  ;;  %v8282_v51 = vld [vmem:[#allocation68_spill] sm:$0xff] }
 0x343   :  { %5634 = vmatprep.mubr.msk.f32.mxu0 %vm455_vm0, %v8228_v52  ;;  %v8283_v52 = vld [vmem:[#allocation69_spill] sm:$0xff] }
 0x346   :  { %3229 = vmatmul.mubr.f32.gmra.mrb[56].mxu0 %v8229_v53 }
 0x347   :  { %5635 = vmatprep.mubr.msk.f32.mxu0 %vm455_vm0, %v8230_v54 }
 0x34a   :  { %3234 = vmatmul.mubr.f32.gmra.mrb[58].mxu0 %v8231_v55 }
 0x34b   :  { %5636 = vmatprep.mubr.msk.f32.mxu0 %vm455_vm0, %v8232_v56 }
 0x34e   :  { %3239 = vmatmul.mubr.f32.gmra.mrb[60].mxu0 %v8233_v57 }
 0x34f   :  { %5637 = vmatprep.mubr.msk.f32.mxu0 %vm455_vm0, %v8234_v58 }
 0x352   :  { %3244 = vmatmul.mubr.f32.gmra.mrb[62].mxu0 %v8235_v59 }
 0x353   :  { %5638 = vmatprep.mubr.msk.f32.mxu0 %vm455_vm0, %v8236_v60 }
 0x356   :  { %3249 = vmatmul.mubr.f32.gmra.mrb[64].mxu0 %v8237_v61  ;;  %v8284_v61 = vld [vmem:[#allocation21_spill] sm:$0xff] }
 0x357   :  { %5639 = vmatprep.mubr.msk.f32.mxu0 %vm455_vm0, %v8238_v62  ;;  %v8285_v62 = vld [vmem:[#allocation70_spill] sm:$0xff] }
 0x35a   :  { %3254 = vmatmul.mubr.f32.gmra.mrb[66].mxu0 %v8239_v63 }
 0x35b   :  { %5640 = vmatprep.mubr.msk.f32.mxu0 %vm455_vm0, %v8240_v0 }
 0x35e   :  { %3259 = vmatmul.mubr.f32.gmra.mrb[68].mxu0 %v8241_v1 }
 0x35f   :  { %5641 = vmatprep.mubr.msk.f32.mxu0 %vm455_vm0, %v8242_v2 }
 0x362   :  { %3264 = vmatmul.mubr.f32.gmra.mrb[70].mxu0 %v8243_v3  ;;  %v8286_v3 = vld [vmem:[#allocation71_spill] sm:$0xff] }
 0x363   :  { %5642 = vmatprep.mubr.msk.f32.mxu0 %vm455_vm0, %v8244_v4 }
 0x366   :  { %3269 = vmatmul.mubr.f32.gmra.mrb[72].mxu0 %v8245_v5 }
 0x367   :  { %5643 = vmatprep.mubr.msk.f32.mxu0 %vm455_vm0, %v8246_v8 }
 0x36a   :  { %3274 = vmatmul.mubr.f32.gmra.mrb[74].mxu0 %v8247_v9 }
 0x36b   :  { %5644 = vmatprep.mubr.msk.f32.mxu0 %vm455_vm0, %v8248_v12  ;;  %v8287_v12 = vld [vmem:[#allocation72_spill] sm:$0xff] }
 0x36e   :  { %3279 = vmatmul.mubr.f32.gmra.mrb[76].mxu0 %v8249_v13 }
 0x36f   :  { %5645 = vmatprep.mubr.msk.f32.mxu0 %vm455_vm0, %v8250_v16 }
 0x372   :  { %3284 = vmatmul.mubr.f32.gmra.mrb[78].mxu0 %v8251_v18 }
 0x373   :  { %5646 = vmatprep.mubr.msk.f32.mxu0 %vm455_vm0, %v8252_v23 }
 0x376   :  { %3289 = vmatmul.mubr.f32.gmra.mrb[80].mxu0 %v8253_v25  ;;  %v8288_v25 = vld [vmem:[#allocation73_spill] sm:$0xff] }
 0x377   :  { %5647 = vmatprep.mubr.msk.f32.mxu0 %vm455_vm0, %v8254_v29 }
 0x37a   :  { %3294 = vmatmul.mubr.f32.gmra.mrb[82].mxu0 %v8255_v30 }
 0x37b   :  { %5648 = vmatprep.mubr.msk.f32.mxu0 %vm455_vm0, %v8256_v38 }
 0x37e   :  { %3299 = vmatmul.mubr.f32.gmra.mrb[84].mxu0 %v8257_v41 }
 0x37f   :  { %5649 = vmatprep.mubr.msk.f32.mxu0 %vm455_vm0, %v8258_v6  ;;  %v8289_v6 = vld [vmem:[#allocation74_spill] sm:$0xff] }
 0x382   :  { %3304 = vmatmul.mubr.f32.gmra.mrb[86].mxu0 %v8259_v10 }
 0x383   :  { %5650 = vmatprep.mubr.msk.f32.mxu0 %vm455_vm0, %v8260_v15 }
 0x386   :  { %3309 = vmatmul.mubr.f32.gmra.mrb[88].mxu0 %v8261_v28 }
 0x387   :  { %5651 = vmatprep.mubr.msk.f32.mxu0 %vm455_vm0, %v8262_v33 }
 0x38a   :  { %3314 = vmatmul.mubr.f32.gmra.mrb[90].mxu0 %v8263_v40  ;;  %v8290_v40 = vld [vmem:[#allocation75_spill] sm:$0xff] }
 0x38b   :  { %5652 = vmatprep.mubr.msk.f32.mxu0 %vm455_vm0, %v8264_v14 }
 0x38e   :  { %3319 = vmatmul.mubr.f32.gmra.mrb[92].mxu0 %v8265_v19 }
 0x38f   :  { %5653 = vmatprep.mubr.msk.f32.mxu0 %vm455_vm0, %v8266_v35 }
 0x392   :  { %3324 = vmatmul.mubr.f32.gmra.mrb[94].mxu0 %v8267_v11 }
 0x393   :  { %5654 = vmatprep.mubr.msk.f32.mxu0 %vm455_vm0, %v8268_v7  ;;  %v8291_v7 = vld [vmem:[#allocation76_spill] sm:$0xff] }
 0x396   :  { %3329 = vmatmul.mubr.f32.gmra.mrb[96].mxu0 %v8269_v21 }
 0x397   :  { %5655 = vmatprep.mubr.msk.f32.mxu0 %vm455_vm0, %v8270_v37 }
 0x39a   :  { %3334 = vmatmul.mubr.f32.gmra.mrb[98].mxu0 %v8271_v39 }
 0x39b   :  { %5656 = vmatprep.mubr.msk.f32.mxu0 %vm455_vm0, %v8272_v36 }
 0x39d   :  { %v6148_v26 = vpop.f32.mrb[10].mxu0 }
 0x39e   :  { %v3049_v42 = vadd.f32 %v6148_v26, %v7876_v32  ;;  %v3031_v17 = vpop.f32.mrb[11].mxu0  ;;  %3339 = vmatmul.mubr.f32.gmra.mrb[100].mxu0 %v8273_v20  ;;  %v8292_v26 = vld [vmem:[#allocation77_spill] sm:$0xff] }
 0x39f   :  { %v3048_v24 = vadd.f32 %v7876_v32, %v3031_v17  ;;  %5657 = vmatprep.mubr.msk.f32.mxu0 %vm455_vm0, %v8274_v27  ;;  %v8293_v27 = vld [vmem:[#allocation78_spill] sm:$0xff] }
 0x3a0   :  { %6548 = vtanh.f32 %v3049_v42 }
 0x3a1   :  { %6550 = vtanh.f32 %v3048_v24 }
 0x3a2   :  { %3344 = vmatmul.mubr.f32.gmra.mrb[102].mxu0 %v8275_v31 }
 0x3a3   :  { %5658 = vmatprep.mubr.msk.f32.mxu0 %vm455_vm0, %v8276_v34 }
 0x3a6   :  { %3349 = vmatmul.mubr.f32.gmra.mrb[104].mxu0 %v8277_v43 }
 0x3a7   :  { %5659 = vmatprep.mubr.msk.f32.mxu0 %vm455_vm0, %v8278_v45 }
 0x3aa   :  { %v6549_v46 = vpop.eup %6548  ;;  %3354 = vmatmul.mubr.f32.gmra.mrb[106].mxu0 %v8279_v47 }
 0x3ab   :  { %v6551_v48 = vpop.eup %6550  ;;  %3053 = vst [vmem:[#allocation2 + $0x8] sm:$0xff] %v6549_v46  ;;  %5660 = vmatprep.mubr.msk.f32.mxu0 %vm455_vm0, %v8280_v49  ;;  %v8294_v46 = vld [vmem:[#allocation79_spill] sm:$0xff] }
 0x3ac   :  { %3052 = vst [vmem:[#allocation2] sm:$0xff] %v6551_v48 }
 0x3ae   :  { %3359 = vmatmul.mubr.f32.gmra.mrb[108].mxu0 %v8281_v50 }
 0x3af   :  { %5661 = vmatprep.mubr.msk.f32.mxu0 %vm455_vm0, %v8282_v51  ;;  %v8295_v51 = vld [vmem:[#allocation80_spill] sm:$0xff] }
 0x3b2   :  { %3364 = vmatmul.mubr.f32.gmra.mrb[110].mxu0 %v8283_v52 }
 0x3c1   :  { %v3120_v53 = vpop.f32.mrb[12].mxu0 }
 0x3c2   :  { %v3122_v54 = vpop.f32.mrb[13].mxu0 }
 0x3c5   :  { %v3125_v55 = vpop.f32.mrb[14].mxu0 }
 0x3c6   :  { %v3127_v56 = vpop.f32.mrb[15].mxu0 }
 0x3c7   :  { %v8296_v56 = vld [vmem:[#allocation81_spill] sm:$0xff] }
 0x3c9   :  { %v3130_v57 = vpop.f32.mrb[16].mxu0 }
 0x3ca   :  { %v3132_v58 = vpop.f32.mrb[17].mxu0  ;;  %6151 = vmatprep.mubr.msk.f32.mxu1 %vm924_vm1, %v3130_v57 }
 0x3cd   :  { %v3135_v59 = vpop.f32.mrb[18].mxu0 }
 0x3ce   :  { %6152 = vmatmul.mubr.msk.f32.vlgmr.msra.gmra.mrb[126].mxu1 %vm924_vm1, %v3135_v59  ;;  %v3137_v60 = vpop.f32.mrb[19].mxu0 }
 0x3cf   :  { %6156 = vmatprep.mubr.msk.f32.mxu1 %vm924_vm1, %v3120_v53  ;;  %6155 = vmatpush3.msra.mxu1 %v8284_v61  ;;  %v8297_v61 = vld [vmem:[#allocation82_spill] sm:$0xff] }
 0x3d0   :  { %6159 = vmatprep.subr.mxu1 %v8285_v62 }
 0x3d1   :  { %v3140_v63 = vpop.f32.mrb[20].mxu0 }
 0x3d2   :  { %v3142_v0 = vpop.f32.mrb[21].mxu0 }
 0x3d5   :  { %v3145_v1 = vpop.f32.mrb[22].mxu0 }
 0x3d6   :  { %6157 = vmatmul.mubr.msk.f32.vlgmr.msra.gmra.mrb[126].mxu1 %vm924_vm1, %v3125_v55  ;;  %v3147_v2 = vpop.f32.mrb[23].mxu0 }
 0x3d7   :  { %6160 = vmatpush3.msra.mxu1 %v8285_v62  ;;  %6161 = vmatprep.mubr.msk.f32.mxu1 %vm924_vm1, %v3140_v63  ;;  %v8298_v2 = vld [vmem:[#allocation83_spill] sm:$0xff] }
 0x3d8   :  { %6164 = vmatprep.subr.mxu1 %v8286_v3 }
 0x3d9   :  { %v3150_v4 = vpop.f32.mrb[24].mxu0 }
 0x3da   :  { %v3152_v5 = vpop.f32.mrb[25].mxu0 }
 0x3dd   :  { %v3155_v8 = vpop.f32.mrb[26].mxu0 }
 0x3de   :  { %6162 = vmatmul.mubr.msk.f32.vlgmr.msra.gmra.mrb[126].mxu1 %vm924_vm1, %v3145_v1  ;;  %v3157_v9 = vpop.f32.mrb[27].mxu0 }
 0x3df   :  { %6165 = vmatpush3.msra.mxu1 %v8286_v3  ;;  %6166 = vmatprep.mubr.msk.f32.mxu1 %vm924_vm1, %v3150_v4  ;;  %v8299_v9 = vld [vmem:[#allocation84_spill] sm:$0xff] }
 0x3e0   :  { %6169 = vmatprep.subr.mxu1 %v8287_v12 }
 0x3e1   :  { %v3160_v13 = vpop.f32.mrb[28].mxu0 }
 0x3e2   :  { %v3162_v16 = vpop.f32.mrb[29].mxu0 }
 0x3e5   :  { %v3165_v18 = vpop.f32.mrb[30].mxu0 }
 0x3e6   :  { %6167 = vmatmul.mubr.msk.f32.vlgmr.msra.gmra.mrb[126].mxu1 %vm924_vm1, %v3155_v8  ;;  %v3167_v23 = vpop.f32.mrb[31].mxu0 }
 0x3e7   :  { %6170 = vmatpush3.msra.mxu1 %v8287_v12  ;;  %6171 = vmatprep.mubr.msk.f32.mxu1 %vm924_vm1, %v3160_v13  ;;  %v8300_v23 = vld [vmem:[#allocation85_spill] sm:$0xff] }
 0x3e8   :  { %6174 = vmatprep.subr.mxu1 %v8288_v25 }
 0x3e9   :  { %v3170_v29 = vpop.f32.mrb[32].mxu0 }
 0x3ea   :  { %v3172_v30 = vpop.f32.mrb[33].mxu0 }
 0x3ed   :  { %v3175_v38 = vpop.f32.mrb[34].mxu0 }
 0x3ee   :  { %6172 = vmatmul.mubr.msk.f32.vlgmr.msra.gmra.mrb[126].mxu1 %vm924_vm1, %v3165_v18  ;;  %v3177_v41 = vpop.f32.mrb[35].mxu0 }
 0x3ef   :  { %6175 = vmatpush3.msra.mxu1 %v8288_v25  ;;  %6176 = vmatprep.mubr.msk.f32.mxu1 %vm924_vm1, %v3170_v29  ;;  %v8301_v41 = vld [vmem:[#allocation86_spill] sm:$0xff] }
 0x3f0   :  { %6179 = vmatprep.subr.mxu1 %v8289_v6 }
 0x3f1   :  { %v3180_v10 = vpop.f32.mrb[36].mxu0 }
 0x3f2   :  { %v3182_v15 = vpop.f32.mrb[37].mxu0 }
 0x3f5   :  { %v3185_v28 = vpop.f32.mrb[38].mxu0 }
 0x3f6   :  { %6177 = vmatmul.mubr.msk.f32.vlgmr.msra.gmra.mrb[126].mxu1 %vm924_vm1, %v3175_v38  ;;  %v3187_v33 = vpop.f32.mrb[39].mxu0 }
 0x3f7   :  { %6180 = vmatpush3.msra.mxu1 %v8289_v6  ;;  %6181 = vmatprep.mubr.msk.f32.mxu1 %vm924_vm1, %v3180_v10  ;;  %v8302_v33 = vld [vmem:[#allocation87_spill] sm:$0xff] }
 0x3f8   :  { %6184 = vmatprep.subr.mxu1 %v8290_v40 }
 0x3f9   :  { %v3190_v14 = vpop.f32.mrb[40].mxu0 }
 0x3fa   :  { %v3192_v19 = vpop.f32.mrb[41].mxu0 }
 0x3fd   :  { %v3195_v35 = vpop.f32.mrb[42].mxu0 }
 0x3fe   :  { %6182 = vmatmul.mubr.msk.f32.vlgmr.msra.gmra.mrb[126].mxu1 %vm924_vm1, %v3185_v28  ;;  %v3197_v11 = vpop.f32.mrb[43].mxu0 }
 0x3ff   :  { %6185 = vmatpush3.msra.mxu1 %v8290_v40  ;;  %6186 = vmatprep.mubr.msk.f32.mxu1 %vm924_vm1, %v3190_v14  ;;  %v8303_v11 = vld [vmem:[#allocation88_spill] sm:$0xff] }
 0x400   :  { %6189 = vmatprep.subr.mxu1 %v8291_v7 }
 0x401   :  { %v3200_v21 = vpop.f32.mrb[44].mxu0 }
 0x402   :  { %v3202_v37 = vpop.f32.mrb[45].mxu0 }
 0x405   :  { %v3205_v39 = vpop.f32.mrb[46].mxu0 }
 0x406   :  { %6187 = vmatmul.mubr.msk.f32.vlgmr.msra.gmra.mrb[126].mxu1 %vm924_vm1, %v3195_v35  ;;  %v3207_v36 = vpop.f32.mrb[47].mxu0 }
 0x407   :  { %6190 = vmatpush3.msra.mxu1 %v8291_v7  ;;  %6191 = vmatprep.mubr.msk.f32.mxu1 %vm924_vm1, %v3200_v21  ;;  %v8304_v36 = vld [vmem:[#allocation89_spill] sm:$0xff] }
 0x408   :  { %6194 = vmatprep.subr.mxu1 %v8292_v26 }
 0x409   :  { %v3210_v42 = vpop.f32.mrb[48].mxu0 }
 0x40a   :  { %v3212_v17 = vpop.f32.mrb[49].mxu0 }
 0x40d   :  { %v3215_v20 = vpop.f32.mrb[50].mxu0 }
 0x40e   :  { %6192 = vmatmul.mubr.msk.f32.vlgmr.msra.gmra.mrb[126].mxu1 %vm924_vm1, %v3205_v39  ;;  %v3217_v24 = vpop.f32.mrb[51].mxu0 }
 0x40f   :  { %6195 = vmatpush3.msra.mxu1 %v8292_v26  ;;  %6196 = vmatprep.mubr.msk.f32.mxu1 %vm924_vm1, %v3210_v42  ;;  %v8305_v24 = vld [vmem:[#allocation90_spill] sm:$0xff] }
 0x410   :  { %6199 = vmatprep.subr.mxu1 %v8293_v27 }
 0x411   :  { %v3220_v31 = vpop.f32.mrb[52].mxu0 }
 0x412   :  { %v3222_v34 = vpop.f32.mrb[53].mxu0 }
 0x415   :  { %v3225_v43 = vpop.f32.mrb[54].mxu0 }
 0x416   :  { %6197 = vmatmul.mubr.msk.f32.vlgmr.msra.gmra.mrb[126].mxu1 %vm924_vm1, %v3215_v20  ;;  %v3227_v45 = vpop.f32.mrb[55].mxu0 }
 0x417   :  { %6200 = vmatpush3.msra.mxu1 %v8293_v27  ;;  %6201 = vmatprep.mubr.msk.f32.mxu1 %vm924_vm1, %v3220_v31 }
 0x418   :  { %6204 = vmatprep.subr.mxu1 %v8294_v46 }
 0x419   :  { %v3230_v47 = vpop.f32.mrb[56].mxu0 }
 0x41a   :  { %v3232_v48 = vpop.f32.mrb[57].mxu0 }
 0x41d   :  { %v3235_v49 = vpop.f32.mrb[58].mxu0 }
 0x41e   :  { %6202 = vmatmul.mubr.msk.f32.vlgmr.msra.gmra.mrb[126].mxu1 %vm924_vm1, %v3225_v43  ;;  %v3237_v50 = vpop.f32.mrb[59].mxu0 }
 0x41f   :  { %6205 = vmatpush3.msra.mxu1 %v8294_v46  ;;  %6206 = vmatprep.mubr.msk.f32.mxu1 %vm924_vm1, %v3230_v47 }
 0x420   :  { %6209 = vmatprep.subr.mxu1 %v8295_v51 }
 0x421   :  { %v3240_v52 = vpop.f32.mrb[60].mxu0 }
 0x422   :  { %v3242_v53 = vpop.f32.mrb[61].mxu0 }
 0x425   :  { %v3245_v54 = vpop.f32.mrb[62].mxu0 }
 0x426   :  { %6207 = vmatmul.mubr.msk.f32.vlgmr.msra.gmra.mrb[126].mxu1 %vm924_vm1, %v3235_v49  ;;  %v3247_v55 = vpop.f32.mrb[63].mxu0 }
 0x427   :  { %6210 = vmatpush3.msra.mxu1 %v8295_v51  ;;  %6211 = vmatprep.mubr.msk.f32.mxu1 %vm924_vm1, %v3240_v52 }
 0x428   :  { %6214 = vmatprep.subr.mxu1 %v8296_v56 }
 0x429   :  { %v3250_v57 = vpop.f32.mrb[64].mxu0 }
 0x42a   :  { %v3252_v58 = vpop.f32.mrb[65].mxu0 }
 0x42d   :  { %v3255_v59 = vpop.f32.mrb[66].mxu0 }
 0x42e   :  { %6212 = vmatmul.mubr.msk.f32.vlgmr.msra.gmra.mrb[126].mxu1 %vm924_vm1, %v3245_v54  ;;  %v3257_v60 = vpop.f32.mrb[67].mxu0 }
 0x42f   :  { %6215 = vmatpush3.msra.mxu1 %v8296_v56  ;;  %6216 = vmatprep.mubr.msk.f32.mxu1 %vm924_vm1, %v3250_v57 }
 0x430   :  { %6219 = vmatprep.subr.mxu1 %v8297_v61 }
 0x431   :  { %v3260_v62 = vpop.f32.mrb[68].mxu0 }
 0x432   :  { %v3262_v63 = vpop.f32.mrb[69].mxu0 }
 0x435   :  { %v3265_v0 = vpop.f32.mrb[70].mxu0 }
 0x436   :  { %6217 = vmatmul.mubr.msk.f32.vlgmr.msra.gmra.mrb[126].mxu1 %vm924_vm1, %v3255_v59  ;;  %v3267_v1 = vpop.f32.mrb[71].mxu0 }
 0x437   :  { %6220 = vmatpush3.msra.mxu1 %v8297_v61  ;;  %6221 = vmatprep.mubr.msk.f32.mxu1 %vm924_vm1, %v3260_v62 }
 0x438   :  { %6224 = vmatprep.subr.mxu1 %v8298_v2 }
 0x439   :  { %v3270_v3 = vpop.f32.mrb[72].mxu0 }
 0x43a   :  { %v3272_v4 = vpop.f32.mrb[73].mxu0 }
 0x43d   :  { %v3275_v5 = vpop.f32.mrb[74].mxu0 }
 0x43e   :  { %6222 = vmatmul.mubr.msk.f32.vlgmr.msra.gmra.mrb[126].mxu1 %vm924_vm1, %v3265_v0  ;;  %v3277_v8 = vpop.f32.mrb[75].mxu0 }
 0x43f   :  { %6225 = vmatpush3.msra.mxu1 %v8298_v2  ;;  %6226 = vmatprep.mubr.msk.f32.mxu1 %vm924_vm1, %v3270_v3 }
 0x440   :  { %6229 = vmatprep.subr.mxu1 %v8299_v9 }
 0x441   :  { %v3280_v12 = vpop.f32.mrb[76].mxu0 }
 0x442   :  { %v3282_v13 = vpop.f32.mrb[77].mxu0 }
 0x445   :  { %v3285_v16 = vpop.f32.mrb[78].mxu0 }
 0x446   :  { %6227 = vmatmul.mubr.msk.f32.vlgmr.msra.gmra.mrb[126].mxu1 %vm924_vm1, %v3275_v5  ;;  %v3287_v18 = vpop.f32.mrb[79].mxu0 }
 0x447   :  { %6230 = vmatpush3.msra.mxu1 %v8299_v9  ;;  %6231 = vmatprep.mubr.msk.f32.mxu1 %vm924_vm1, %v3280_v12 }
 0x448   :  { %6234 = vmatprep.subr.mxu1 %v8300_v23 }
 0x449   :  { %v3290_v25 = vpop.f32.mrb[80].mxu0 }
 0x44a   :  { %v3292_v29 = vpop.f32.mrb[81].mxu0 }
 0x44d   :  { %v3295_v30 = vpop.f32.mrb[82].mxu0 }
 0x44e   :  { %6232 = vmatmul.mubr.msk.f32.vlgmr.msra.gmra.mrb[126].mxu1 %vm924_vm1, %v3285_v16  ;;  %v3297_v38 = vpop.f32.mrb[83].mxu0 }
 0x44f   :  { %6235 = vmatpush3.msra.mxu1 %v8300_v23  ;;  %6236 = vmatprep.mubr.msk.f32.mxu1 %vm924_vm1, %v3290_v25 }
 0x450   :  { %6239 = vmatprep.subr.mxu1 %v8301_v41 }
 0x451   :  { %v3300_v6 = vpop.f32.mrb[84].mxu0 }
 0x452   :  { %v3302_v10 = vpop.f32.mrb[85].mxu0 }
 0x455   :  { %v3305_v15 = vpop.f32.mrb[86].mxu0 }
 0x456   :  { %6237 = vmatmul.mubr.msk.f32.vlgmr.msra.gmra.mrb[126].mxu1 %vm924_vm1, %v3295_v30  ;;  %v3307_v28 = vpop.f32.mrb[87].mxu0 }
 0x457   :  { %6240 = vmatpush3.msra.mxu1 %v8301_v41  ;;  %6241 = vmatprep.mubr.msk.f32.mxu1 %vm924_vm1, %v3300_v6 }
 0x458   :  { %6244 = vmatprep.subr.mxu1 %v8302_v33 }
 0x459   :  { %v3310_v40 = vpop.f32.mrb[88].mxu0 }
 0x45a   :  { %v3312_v14 = vpop.f32.mrb[89].mxu0 }
 0x45d   :  { %v3315_v19 = vpop.f32.mrb[90].mxu0 }
 0x45e   :  { %6242 = vmatmul.mubr.msk.f32.vlgmr.msra.gmra.mrb[126].mxu1 %vm924_vm1, %v3305_v15  ;;  %v3317_v35 = vpop.f32.mrb[91].mxu0 }
 0x45f   :  { %6245 = vmatpush3.msra.mxu1 %v8302_v33  ;;  %6246 = vmatprep.mubr.msk.f32.mxu1 %vm924_vm1, %v3310_v40 }
 0x460   :  { %6249 = vmatprep.subr.mxu1 %v8303_v11 }
 0x461   :  { %v3320_v7 = vpop.f32.mrb[92].mxu0 }
 0x462   :  { %v3322_v21 = vpop.f32.mrb[93].mxu0 }
 0x465   :  { %v3325_v37 = vpop.f32.mrb[94].mxu0 }
 0x466   :  { %6247 = vmatmul.mubr.msk.f32.vlgmr.msra.gmra.mrb[126].mxu1 %vm924_vm1, %v3315_v19  ;;  %v3327_v39 = vpop.f32.mrb[95].mxu0 }
 0x467   :  { %6250 = vmatpush3.msra.mxu1 %v8303_v11  ;;  %6251 = vmatprep.mubr.msk.f32.mxu1 %vm924_vm1, %v3320_v7 }
 0x468   :  { %6254 = vmatprep.subr.mxu1 %v8304_v36 }
 0x469   :  { %v3330_v26 = vpop.f32.mrb[96].mxu0 }
 0x46a   :  { %v3332_v42 = vpop.f32.mrb[97].mxu0 }
 0x46d   :  { %v3335_v17 = vpop.f32.mrb[98].mxu0 }
 0x46e   :  { %6252 = vmatmul.mubr.msk.f32.vlgmr.msra.gmra.mrb[126].mxu1 %vm924_vm1, %v3325_v37  ;;  %v3337_v20 = vpop.f32.mrb[99].mxu0 }
 0x46f   :  { %6255 = vmatpush3.msra.mxu1 %v8304_v36  ;;  %6256 = vmatprep.mubr.msk.f32.mxu1 %vm924_vm1, %v3330_v26 }
 0x470   :  { %6259 = vmatprep.subr.mxu1 %v8305_v24 }
 0x471   :  { %v3340_v27 = vpop.f32.mrb[100].mxu0 }
 0x472   :  { %v3342_v31 = vpop.f32.mrb[101].mxu0 }
 0x475   :  { %v3345_v34 = vpop.f32.mrb[102].mxu0 }
 0x476   :  { %6257 = vmatmul.mubr.msk.f32.vlgmr.msra.gmra.mrb[126].mxu1 %vm924_vm1, %v3335_v17  ;;  %v3347_v43 = vpop.f32.mrb[103].mxu0 }
 0x477   :  { %6260 = vmatpush3.msra.mxu1 %v8305_v24  ;;  %6261 = vmatprep.mubr.msk.f32.mxu1 %vm924_vm1, %v3340_v27 }
 0x478   :  { %6264 = vmatprep.subr.mxu1 %v7684_v44 }
 0x479   :  { %v3350_v45 = vpop.f32.mrb[104].mxu0 }
 0x47a   :  { %v3352_v46 = vpop.f32.mrb[105].mxu0 }
 0x47d   :  { %v3355_v47 = vpop.f32.mrb[106].mxu0 }
 0x47e   :  { %6262 = vmatmul.mubr.msk.f32.vlgmr.msra.gmra.mrb[126].mxu1 %vm924_vm1, %v3345_v34  ;;  %v3357_v48 = vpop.f32.mrb[107].mxu0 }
 0x47f   :  { %6265 = vmatpush3.msra.mxu1 %v7684_v44  ;;  %6266 = vmatprep.mubr.msk.f32.mxu1 %vm924_vm1, %v3350_v45 }
 0x480   :  { %6269 = vmatprep.subr.mxu1 %v7693_v22 }
 0x481   :  { %v3360_v49 = vpop.f32.mrb[108].mxu0 }
 0x482   :  { %v3362_v50 = vpop.f32.mrb[109].mxu0 }
 0x485   :  { %v3365_v51 = vpop.f32.mrb[110].mxu0 }
 0x486   :  { %6267 = vmatmul.mubr.msk.f32.vlgmr.msra.gmra.mrb[126].mxu1 %vm924_vm1, %v3355_v47  ;;  %v3367_v52 = vpop.f32.mrb[111].mxu0 }
 0x487   :  { %6270 = vmatpush3.msra.mxu1 %v7693_v22  ;;  %6271 = vmatprep.mubr.msk.f32.mxu1 %vm924_vm1, %v3360_v49 }
 0x48e   :  { %6272 = vmatmul.mubr.msk.f32.vlgmr.msra.gmra.mrb[126].mxu1 %vm924_vm1, %v3365_v51 }
 0x561   :  { %v6273_v53 = vpop.f32.mrb[126].mxu1 }
 0x562   :  { %v5466_v54 = vadd.f32 %v6273_v53, %v7876_v32  ;;  %v5454_v44 = vpop.f32.mrb[127].mxu1 }
 0x563   :  { %v5465_v55 = vadd.f32 %v7876_v32, %v5454_v44 }
 0x564   :  { %6552 = vtanh.f32 %v5466_v54 }
 0x565   :  { %6554 = vtanh.f32 %v5465_v55 }
 0x56e   :  { %v6553_v56 = vpop.eup %6552 }
 0x56f   :  { %v6555_v57 = vpop.eup %6554  ;;  %5470 = vst [vmem:[#allocation2 + $0x18] sm:$0xff] %v6553_v56 }
 0x570   :  { %5469 = vst [vmem:[#allocation2 + $0x10] sm:$0xff] %v6555_v57 }
 0x571   :  { %6568 = shalt.err (!%p6565_p4)
}
 0x572   :  { %s6569_s6 = scalar_lea.hbm %s8014_s5, 512 }
 0x573   :  { %p6570_p5 = scmp.ne.s32.totalorder %s8014_s5, %s6569_s6  ;;  %p6573_p6 = scmp.lt.u32.totalorder %s6569_s6, %s8014_s5 }
 0x575   :  { %p6575_p7 = pnand %p6573_p6, %p6570_p5 }
 0x577   :  { %6578 = shalt.err (!%p6575_p7)
}
 0x578   :  { %s6583_s10 = smov 128   ;;  %s6584_s11 = smov 8  }
 0x579   :  { %5482 = dma.vmem_to_hbm [thread:$0]  %s5477_s27, 512, %s8014_s5, [#allocation3], %s6583_s10, %s6583_s10, %s6584_s11  }
 0x57a   :  { %6579 = dma.done.wait [#allocation3], 512  }
 0x57b   :  { %6580 = vsyncadd [#allocation3], 4294966784 }
 0x57c   :  { %5486 = vsyncpa [#allocation3], 1 }

</bundles_post_ra>
